<compile_context>
chip_gen: v6e
topology: v6e:2x2x1
jax: 0.10.0
libtpu: 0.0.40
codegen_flags: <defaults>
</compile_context>

<pallas_src>
import math
from functools import partial

import jax
import jax.numpy as jnp
from jax.experimental import pallas as pl
from jax.experimental.pallas import tpu as pltpu


# ----------------------------- kernel helpers -------------------------------

def _layernorm(h, w, b, eps=1e-5):
    # h: (R, C); w, b: (1, C); all math in f32.
    mu = jnp.mean(h, axis=-1, keepdims=True)
    var = jnp.mean((h - mu) ** 2, axis=-1, keepdims=True)
    return (h - mu) * jax.lax.rsqrt(var + eps) * w + b


def _gelu_exact(x):
    # nn.GELU() default is the exact erf-based GELU.
    return 0.5 * x * (1.0 + jax.lax.erf(x * (1.0 / math.sqrt(2.0))))


# ------------------------------- the kernel ---------------------------------

def block_kernel(n_head, tq, mxu_dtype,
                 xf_ref, xt_ref,
                 ln1w_ref, ln1b_ref,
                 wq_ref, bq_ref, wk_ref, bk_ref, wv_ref, bv_ref,
                 wo_ref, bo_ref,
                 ln2w_ref, ln2b_ref,
                 wfc_ref, bfc_ref,
                 wpr_ref, bpr_ref,
                 o_ref,
                 kh_scr, vh_scr):
    T = xf_ref.shape[1]
    C = xf_ref.shape[2]
    hd = C // n_head
    cast = lambda a: a.astype(mxu_dtype)   # no-op when mxu_dtype == f32

    # ---- K/V: computed ONCE per batch element, kept resident in VMEM ----
    # (q grid axis is 'arbitrary', so program_id(1)==0 runs before the other
    #  q-tiles of the same batch element on every core.)
    @pl.when(pl.program_id(1) == 0)
    def _():
        h_kv = cast(_layernorm(xf_ref[0], ln1w_ref[...], ln1b_ref[...]))   # (T, C)
        k2 = jnp.dot(h_kv, wk_ref[...],
                     preferred_element_type=jnp.float32) + bk_ref[...]     # (T, C)
        v2 = jnp.dot(h_kv, wv_ref[...],
                     preferred_element_type=jnp.float32) + bv_ref[...]     # (T, C)
        kh_scr[...] = jnp.transpose(k2.reshape(T, n_head, hd),
                                    (1, 0, 2)).astype(kh_scr.dtype)        # (H, T, hd)
        vh_scr[...] = jnp.transpose(v2.reshape(T, n_head, hd),
                                    (1, 0, 2)).astype(vh_scr.dtype)        # (H, T, hd)

    # ---- attention branch on this q-tile: x + attn(ln_1(x)) ----
    xt = xt_ref[0]                                                         # (TQ, C)
    h_q = _layernorm(xt, ln1w_ref[...], ln1b_ref[...])                     # (TQ, C)
    # 1/sqrt(hd) is already folded into wq/bq.
    q2 = jnp.dot(cast(h_q), wq_ref[...],
                 preferred_element_type=jnp.float32) + bq_ref[...]         # (TQ, C)
    qh = cast(jnp.transpose(q2.reshape(tq, n_head, hd), (1, 0, 2)))        # (H, TQ, hd)

    # Head-batched scores against the resident K.
    s = jnp.einsum('hqd,hkd->hqk', qh, kh_scr[...],
                   preferred_element_type=jnp.float32)                     # (H, TQ, T)

    # Per-q-tile causal mask (TQ, T), offset by the tile's first row.
    q0 = pl.program_id(1) * tq
    row = q0 + jax.lax.broadcasted_iota(jnp.int32, (tq, T), 0)
    col = jax.lax.broadcasted_iota(jnp.int32, (tq, T), 1)
    s = jnp.where((col <= row)[None, :, :], s, -jnp.inf)

    s = s - jnp.max(s, axis=-1, keepdims=True)
    p = jnp.exp(s)
    p = p * pl.reciprocal(jnp.sum(p, axis=-1, keepdims=True), approx=True)

    yh = jnp.einsum('hqk,hkd->hqd', cast(p), vh_scr[...],
                    preferred_element_type=jnp.float32)                    # (H, TQ, hd)

    # Head concat = one transpose + reshape; output projection is a single
    # full-C contraction on the MXU (no per-head partial-lane stores).
    y = jnp.transpose(yh, (1, 0, 2)).reshape(tq, C)                        # (TQ, C)
    attn = jnp.dot(cast(y), wo_ref[...],
                   preferred_element_type=jnp.float32) + bo_ref[...]
    x1 = xt + attn                                                         # (TQ, C)

    # ---- MLP branch: x1 + mlp(ln_2(x1)) ----
    h2 = _layernorm(x1, ln2w_ref[...], ln2b_ref[...])
    ff = jnp.dot(cast(h2), wfc_ref[...],
                 preferred_element_type=jnp.float32) + bfc_ref[...]        # (TQ, 4C)
    ff = _gelu_exact(ff)
    mlp = jnp.dot(cast(ff), wpr_ref[...],
                  preferred_element_type=jnp.float32) + bpr_ref[...]       # (TQ, C)

    # Single store of the finished tile.
    o_ref[0] = (x1 + mlp).astype(o_ref.dtype)


# ------------------------------- wrapper -------------------------------------

def _device_vmem_bytes():
    try:
        return int(pltpu.get_tpu_info().vmem_capacity_bytes)
    except Exception:
        return 64 * 1024 * 1024   # conservative (v7x per-TC) fallback


def _pick_tq(T, target):
    """Largest q-tile <= target that divides T (multiple of 8 when tiling)."""
    if T <= target:
        return T
    for cand in range(target, 7, -8):
        if T % cand == 0:
            return cand
    # TODO(synk): pad T to a multiple of 8*target instead of falling back to
    # an untiled q axis for awkward sequence lengths.
    return T


def gpt2_block(x, params, n_head, tq=None, mxu_dtype=jnp.float32):
    B, T, C = x.shape
    assert C % n_head == 0
    hd = C // n_head

    vmem_cap = _device_vmem_bytes()
    if tq is None:
        # 64 MiB VMEM (v7x) -> smaller q-tile; 128 MiB (v5e/v6e) -> bigger tile.
        tq = _pick_tq(T, target=128 if vmem_cap <= (96 << 20) else 256)
    assert T % tq == 0
    nq = T // tq

    # ---- weight prep (cheap, weight-sized ops; done once per call) ----
    scale = 1.0 / math.sqrt(hd)
    wqkv, bqkv = params["wqkv"], params["bqkv"]
    wq = (wqkv[:, 0:C] * scale).astype(mxu_dtype)          # scale folded into Q
    wk = wqkv[:, C:2 * C].astype(mxu_dtype)
    wv = wqkv[:, 2 * C:3 * C].astype(mxu_dtype)
    bq = bqkv[:, 0:C] * scale                              # biases stay f32
    bk = bqkv[:, C:2 * C]
    bv = bqkv[:, 2 * C:3 * C]

    weight_args = [
        params["ln1w"], params["ln1b"],
        wq, bq, wk, bk, wv, bv,
        params["wo"].astype(mxu_dtype), params["bo"],
        params["ln2w"], params["ln2b"],
        params["wfc"].astype(mxu_dtype), params["bfc"],
        params["wpr"].astype(mxu_dtype), params["bpr"],
    ]

    # Whole weights live in VMEM for the kernel's duration: one copy, no
    # per-grid-step DMA, no double-buffering of never-changing blocks.
    weight_spec = pl.BlockSpec(memory_space=pltpu.MemorySpace.VMEM)

    in_specs = [
        # Full sequence (K/V side): block index constant along the q axis, so
        # it is DMA'd only when the batch index changes.
        pl.BlockSpec((1, T, C), lambda b, q: (b, 0, 0)),
        # Query/output rows for this tile.
        pl.BlockSpec((1, tq, C), lambda b, q: (b, q, 0)),
    ] + [weight_spec] * len(weight_args)

    # Advisory VMEM limit derived from the actual footprint (not hard-coded).
    mxu_b = jnp.dtype(mxu_dtype).itemsize
    w_bytes = sum(int(a.size) * a.dtype.itemsize for a in weight_args)
    est = (w_bytes
           + 2 * (T * C + 2 * tq * C) * x.dtype.itemsize          # pipelined x / out blocks
           + 2 * T * C * mxu_b                                     # resident K/V scratch
           + (2 * n_head * tq * T + tq * 4 * C + 8 * tq * C) * 4)  # s, p, ff, misc temps
    vmem_limit = int(min(max(est * 3 // 2, 32 << 20), min(vmem_cap, 128 << 20)))

    return pl.pallas_call(
        partial(block_kernel, n_head, tq, mxu_dtype),
        out_shape=jax.ShapeDtypeStruct((B, T, C), x.dtype),
        grid=(B, nq),
        in_specs=in_specs,
        out_specs=pl.BlockSpec((1, tq, C), lambda b, q: (b, q, 0)),
        scratch_shapes=[pltpu.VMEM((n_head, T, hd), mxu_dtype),    # K heads
                        pltpu.VMEM((n_head, T, hd), mxu_dtype)],   # V heads
        compiler_params=pltpu.CompilerParams(
            # q axis MUST be 'arbitrary': the K/V scratch is written at q == 0
            # and reused by later q-tiles of the same batch element.
            dimension_semantics=("parallel", "arbitrary"),
            vmem_limit_bytes=vmem_limit,
        ),
    )(x, x, *weight_args)


# ------------------------------ reference ------------------------------------

def ref_block(x, p, n_head):
    B, T, C = x.shape
    hd = C // n_head

    def ln(h, w, b, eps=1e-5):
        mu = jnp.mean(h, axis=-1, keepdims=True)
        var = jnp.mean((h - mu) ** 2, axis=-1, keepdims=True)
        return (h - mu) * jax.lax.rsqrt(var + eps) * w + b

    h = ln(x, p["ln1w"], p["ln1b"])
    qkv = h @ p["wqkv"] + p["bqkv"]
    q, k, v = jnp.split(qkv, 3, axis=-1)
    q = q.reshape(B, T, n_head, hd).transpose(0, 2, 1, 3)
    k = k.reshape(B, T, n_head, hd).transpose(0, 2, 1, 3)
    v = v.reshape(B, T, n_head, hd).transpose(0, 2, 1, 3)
    s = (q @ k.transpose(0, 1, 3, 2)) / math.sqrt(hd)
    causal = jnp.tril(jnp.ones((T, T), dtype=bool))
    s = jnp.where(causal, s, -jnp.inf)
    a = jax.nn.softmax(s, axis=-1)
    y = (a @ v).transpose(0, 2, 1, 3).reshape(B, T, C)
    x1 = x + y @ p["wo"] + p["bo"]

    h2 = ln(x1, p["ln2w"], p["ln2b"])
    ff = h2 @ p["wfc"] + p["bfc"]
    ff = 0.5 * ff * (1.0 + jax.lax.erf(ff / math.sqrt(2.0)))
    return x1 + ff @ p["wpr"] + p["bpr"]


# -------------------------------- main ---------------------------------------

if __name__ == "__main__":
    B, T, C, n_head = 2, 8, 32, 4

    key = jax.random.PRNGKey(0)
    keys = jax.random.split(key, 10)
    std = 0.02

    params = {
        "ln1w": jnp.ones((1, C), jnp.float32),
        "ln1b": jnp.zeros((1, C), jnp.float32),
        "wqkv": std * jax.random.normal(keys[0], (C, 3 * C), jnp.float32),
        "bqkv": std * jax.random.normal(keys[1], (1, 3 * C), jnp.float32),
        "wo":   std * jax.random.normal(keys[2], (C, C), jnp.float32),
        "bo":   std * jax.random.normal(keys[3], (1, C), jnp.float32),
        "ln2w": jnp.ones((1, C), jnp.float32),
        "ln2b": jnp.zeros((1, C), jnp.float32),
        "wfc":  std * jax.random.normal(keys[4], (C, 4 * C), jnp.float32),
        "bfc":  std * jax.random.normal(keys[5], (1, 4 * C), jnp.float32),
        "wpr":  std * jax.random.normal(keys[6], (4 * C, C), jnp.float32),
        "bpr":  std * jax.random.normal(keys[7], (1, C), jnp.float32),
    }

    x = jax.random.normal(keys[8], (B, T, C), jnp.float32)

    # f32 MXU operands here so the check is (near-)exact; pass
    # mxu_dtype=jnp.bfloat16 at real GPT-2 sizes for ~2x MXU / half weight VMEM.
    out = gpt2_block(x, params, n_head, mxu_dtype=jnp.float32)
    out = jax.block_until_ready(out)

    ref = ref_block(x, params, n_head)
    assert out.shape == (B, T, C)
    # Tolerance covers the EUP approximate-reciprocal softmax normalization.
    assert jnp.allclose(out, ref, atol=1e-3, rtol=1e-3), (
        f"max abs err = {jnp.max(jnp.abs(out - ref))}")

    print("KERNEL_OK")
</pallas_src>

<mosaic_0001>
module attributes {stable_mosaic.version = 11 : i64} {
  func.func @block_kernel(%arg0: i32, %arg1: i32, %arg2: memref<1x8x32xf32, #tpu.memory_space<vmem>>, %arg3: memref<1x8x32xf32, #tpu.memory_space<vmem>>, %arg4: memref<1x32xf32, #tpu.memory_space<vmem>>, %arg5: memref<1x32xf32, #tpu.memory_space<vmem>>, %arg6: memref<32x32xf32, #tpu.memory_space<vmem>>, %arg7: memref<1x32xf32, #tpu.memory_space<vmem>>, %arg8: memref<32x32xf32, #tpu.memory_space<vmem>>, %arg9: memref<1x32xf32, #tpu.memory_space<vmem>>, %arg10: memref<32x32xf32, #tpu.memory_space<vmem>>, %arg11: memref<1x32xf32, #tpu.memory_space<vmem>>, %arg12: memref<32x32xf32, #tpu.memory_space<vmem>>, %arg13: memref<1x32xf32, #tpu.memory_space<vmem>>, %arg14: memref<1x32xf32, #tpu.memory_space<vmem>>, %arg15: memref<1x32xf32, #tpu.memory_space<vmem>>, %arg16: memref<32x128xf32, #tpu.memory_space<vmem>>, %arg17: memref<1x128xf32, #tpu.memory_space<vmem>>, %arg18: memref<128x32xf32, #tpu.memory_space<vmem>>, %arg19: memref<1x32xf32, #tpu.memory_space<vmem>>, %arg20: memref<1x8x32xf32, #tpu.memory_space<vmem>>, %arg21: memref<4x8x8xf32, #tpu.memory_space<vmem>>, %arg22: memref<4x8x8xf32, #tpu.memory_space<vmem>>) attributes {dimension_semantics = [#tpu.dimension_semantics<parallel>, #tpu.dimension_semantics<arbitrary>], iteration_bounds = array<i64: 2, 1>, scalar_prefetch = 0 : i64, scratch_operands = 2 : i64, tpu.core_type = #tpu.core_type<tc>, window_params = [{transform_indices = @transform_0, window_bounds = array<i64: 1, 8, 32>}, {transform_indices = @transform_1, window_bounds = array<i64: 1, 8, 32>}, {pipeline_mode = #tpu.pipeline_mode<synchronous>, transform_indices = @transform_2, window_bounds = array<i64: 1, 32>}, {pipeline_mode = #tpu.pipeline_mode<synchronous>, transform_indices = @transform_3, window_bounds = array<i64: 1, 32>}, {pipeline_mode = #tpu.pipeline_mode<synchronous>, transform_indices = @transform_4, window_bounds = array<i64: 32, 32>}, {pipeline_mode = #tpu.pipeline_mode<synchronous>, transform_indices = @transform_5, window_bounds = array<i64: 1, 32>}, {pipeline_mode = #tpu.pipeline_mode<synchronous>, transform_indices = @transform_6, window_bounds = array<i64: 32, 32>}, {pipeline_mode = #tpu.pipeline_mode<synchronous>, transform_indices = @transform_7, window_bounds = array<i64: 1, 32>}, {pipeline_mode = #tpu.pipeline_mode<synchronous>, transform_indices = @transform_8, window_bounds = array<i64: 32, 32>}, {pipeline_mode = #tpu.pipeline_mode<synchronous>, transform_indices = @transform_9, window_bounds = array<i64: 1, 32>}, {pipeline_mode = #tpu.pipeline_mode<synchronous>, transform_indices = @transform_10, window_bounds = array<i64: 32, 32>}, {pipeline_mode = #tpu.pipeline_mode<synchronous>, transform_indices = @transform_11, window_bounds = array<i64: 1, 32>}, {pipeline_mode = #tpu.pipeline_mode<synchronous>, transform_indices = @transform_12, window_bounds = array<i64: 1, 32>}, {pipeline_mode = #tpu.pipeline_mode<synchronous>, transform_indices = @transform_13, window_bounds = array<i64: 1, 32>}, {pipeline_mode = #tpu.pipeline_mode<synchronous>, transform_indices = @transform_14, window_bounds = array<i64: 32, 128>}, {pipeline_mode = #tpu.pipeline_mode<synchronous>, transform_indices = @transform_15, window_bounds = array<i64: 1, 128>}, {pipeline_mode = #tpu.pipeline_mode<synchronous>, transform_indices = @transform_16, window_bounds = array<i64: 128, 32>}, {pipeline_mode = #tpu.pipeline_mode<synchronous>, transform_indices = @transform_17, window_bounds = array<i64: 1, 32>}, {transform_indices = @transform_18, window_bounds = array<i64: 1, 8, 32>}]} {
    %c0_i32 = arith.constant 0 : i32
    %0 = arith.cmpi eq, %arg1, %c0_i32 : i32
    %1 = arith.extui %0 : i1 to i32
    %c0_i32_0 = arith.constant 0 : i32
    %2 = arith.cmpi ne, %1, %c0_i32_0 : i32
    scf.if %2 {
      %c0_57 = arith.constant 0 : index
      %c0_58 = arith.constant 0 : index
      %c0_59 = arith.constant 0 : index
      %115 = vector.load %arg2[%c0_57, %c0_58, %c0_59] : memref<1x8x32xf32, #tpu.memory_space<vmem>>, vector<1x8x32xf32>
      %116 = vector.shape_cast %115 : vector<1x8x32xf32> to vector<8x32xf32>
      %c0_60 = arith.constant 0 : index
      %c0_61 = arith.constant 0 : index
      %117 = vector.load %arg4[%c0_60, %c0_61] : memref<1x32xf32, #tpu.memory_space<vmem>>, vector<1x32xf32>
      %c0_62 = arith.constant 0 : index
      %c0_63 = arith.constant 0 : index
      %118 = vector.load %arg5[%c0_62, %c0_63] : memref<1x32xf32, #tpu.memory_space<vmem>>, vector<1x32xf32>
      %cst_64 = arith.constant dense<0.000000e+00> : vector<8xf32>
      %119 = vector.multi_reduction <add>, %116, %cst_64 [1] : vector<8x32xf32> to vector<8xf32>
      %120 = vector.shape_cast %119 : vector<8xf32> to vector<8x1xf32>
      %cst_65 = arith.constant 3.200000e+01 : f32
      %121 = vector.broadcast %cst_65 : f32 to vector<8x1xf32>
      %122 = arith.divf %120, %121 : vector<8x1xf32>
      %123 = vector.broadcast %122 : vector<8x1xf32> to vector<8x32xf32>
      %124 = arith.subf %116, %123 : vector<8x32xf32>
      %125 = arith.mulf %124, %124 : vector<8x32xf32>
      %cst_66 = arith.constant dense<0.000000e+00> : vector<8xf32>
      %126 = vector.multi_reduction <add>, %125, %cst_66 [1] : vector<8x32xf32> to vector<8xf32>
      %127 = vector.shape_cast %126 : vector<8xf32> to vector<8x1xf32>
      %cst_67 = arith.constant 3.200000e+01 : f32
      %128 = vector.broadcast %cst_67 : f32 to vector<8x1xf32>
      %129 = arith.divf %127, %128 : vector<8x1xf32>
      %130 = vector.broadcast %122 : vector<8x1xf32> to vector<8x32xf32>
      %131 = arith.subf %116, %130 : vector<8x32xf32>
      %cst_68 = arith.constant 9.99999974E-6 : f32
      %132 = vector.broadcast %cst_68 : f32 to vector<8x1xf32>
      %133 = arith.addf %129, %132 : vector<8x1xf32>
      %134 = math.rsqrt %133 : vector<8x1xf32>
      %135 = vector.broadcast %134 : vector<8x1xf32> to vector<8x32xf32>
      %136 = arith.mulf %131, %135 : vector<8x32xf32>
      %137 = vector.broadcast %117 : vector<1x32xf32> to vector<8x32xf32>
      %138 = arith.mulf %136, %137 : vector<8x32xf32>
      %139 = vector.broadcast %118 : vector<1x32xf32> to vector<8x32xf32>
      %140 = arith.addf %138, %139 : vector<8x32xf32>
      %c0_69 = arith.constant 0 : index
      %c0_70 = arith.constant 0 : index
      %141 = vector.load %arg8[%c0_69, %c0_70] : memref<32x32xf32, #tpu.memory_space<vmem>>, vector<32x32xf32>
      %cst_71 = arith.constant dense<0.000000e+00> : vector<8x32xf32>
      %142 = tpu.matmul %140, %141, %cst_71 {dimension_numbers = #tpu.dot_dimension_numbers<[1], [0], [0], [1], [0, 0, 1, 1], [], []>} : vector<8x32xf32>, vector<32x32xf32>, vector<8x32xf32> -> vector<8x32xf32>
      %c0_72 = arith.constant 0 : index
      %c0_73 = arith.constant 0 : index
      %143 = vector.load %arg9[%c0_72, %c0_73] : memref<1x32xf32, #tpu.memory_space<vmem>>, vector<1x32xf32>
      %144 = vector.broadcast %143 : vector<1x32xf32> to vector<8x32xf32>
      %145 = arith.addf %142, %144 : vector<8x32xf32>
      %c0_74 = arith.constant 0 : index
      %c0_75 = arith.constant 0 : index
      %146 = vector.load %arg10[%c0_74, %c0_75] : memref<32x32xf32, #tpu.memory_space<vmem>>, vector<32x32xf32>
      %cst_76 = arith.constant dense<0.000000e+00> : vector<8x32xf32>
      %147 = tpu.matmul %140, %146, %cst_76 {dimension_numbers = #tpu.dot_dimension_numbers<[1], [0], [0], [1], [0, 0, 1, 1], [], []>} : vector<8x32xf32>, vector<32x32xf32>, vector<8x32xf32> -> vector<8x32xf32>
      %c0_77 = arith.constant 0 : index
      %c0_78 = arith.constant 0 : index
      %148 = vector.load %arg11[%c0_77, %c0_78] : memref<1x32xf32, #tpu.memory_space<vmem>>, vector<1x32xf32>
      %149 = vector.broadcast %148 : vector<1x32xf32> to vector<8x32xf32>
      %150 = arith.addf %147, %149 : vector<8x32xf32>
      %151 = vector.shape_cast %145 : vector<8x32xf32> to vector<8x4x8xf32>
      %152 = tpu.transpose %151, [1, 0, 2] : vector<8x4x8xf32> -> vector<4x8x8xf32>
      %c0_79 = arith.constant 0 : index
      %c0_80 = arith.constant 0 : index
      %c0_81 = arith.constant 0 : index
      %153 = vector.load %arg21[%c0_79, %c0_80, %c0_81] : memref<4x8x8xf32, #tpu.memory_space<vmem>>, vector<4x8x8xf32>
      tpu.vector_store %arg21[%c0_79, %c0_80, %c0_81], %152 {strides = array<i32>} : memref<4x8x8xf32, #tpu.memory_space<vmem>>, vector<4x8x8xf32>,
      %154 = vector.shape_cast %150 : vector<8x32xf32> to vector<8x4x8xf32>
      %155 = tpu.transpose %154, [1, 0, 2] : vector<8x4x8xf32> -> vector<4x8x8xf32>
      %c0_82 = arith.constant 0 : index
      %c0_83 = arith.constant 0 : index
      %c0_84 = arith.constant 0 : index
      %156 = vector.load %arg22[%c0_82, %c0_83, %c0_84] : memref<4x8x8xf32, #tpu.memory_space<vmem>>, vector<4x8x8xf32>
      tpu.vector_store %arg22[%c0_82, %c0_83, %c0_84], %155 {strides = array<i32>} : memref<4x8x8xf32, #tpu.memory_space<vmem>>, vector<4x8x8xf32>,
    } else {
    }
    %c0 = arith.constant 0 : index
    %c0_1 = arith.constant 0 : index
    %c0_2 = arith.constant 0 : index
    %3 = vector.load %arg3[%c0, %c0_1, %c0_2] : memref<1x8x32xf32, #tpu.memory_space<vmem>>, vector<1x8x32xf32>
    %4 = vector.shape_cast %3 : vector<1x8x32xf32> to vector<8x32xf32>
    %c0_3 = arith.constant 0 : index
    %c0_4 = arith.constant 0 : index
    %5 = vector.load %arg4[%c0_3, %c0_4] : memref<1x32xf32, #tpu.memory_space<vmem>>, vector<1x32xf32>
    %c0_5 = arith.constant 0 : index
    %c0_6 = arith.constant 0 : index
    %6 = vector.load %arg5[%c0_5, %c0_6] : memref<1x32xf32, #tpu.memory_space<vmem>>, vector<1x32xf32>
    %cst = arith.constant dense<0.000000e+00> : vector<8xf32>
    %7 = vector.multi_reduction <add>, %4, %cst [1] : vector<8x32xf32> to vector<8xf32>
    %8 = vector.shape_cast %7 : vector<8xf32> to vector<8x1xf32>
    %cst_7 = arith.constant 3.200000e+01 : f32
    %9 = vector.broadcast %cst_7 : f32 to vector<8x1xf32>
    %10 = arith.divf %8, %9 : vector<8x1xf32>
    %11 = vector.broadcast %10 : vector<8x1xf32> to vector<8x32xf32>
    %12 = arith.subf %4, %11 : vector<8x32xf32>
    %13 = arith.mulf %12, %12 : vector<8x32xf32>
    %cst_8 = arith.constant dense<0.000000e+00> : vector<8xf32>
    %14 = vector.multi_reduction <add>, %13, %cst_8 [1] : vector<8x32xf32> to vector<8xf32>
    %15 = vector.shape_cast %14 : vector<8xf32> to vector<8x1xf32>
    %cst_9 = arith.constant 3.200000e+01 : f32
    %16 = vector.broadcast %cst_9 : f32 to vector<8x1xf32>
    %17 = arith.divf %15, %16 : vector<8x1xf32>
    %18 = vector.broadcast %10 : vector<8x1xf32> to vector<8x32xf32>
    %19 = arith.subf %4, %18 : vector<8x32xf32>
    %cst_10 = arith.constant 9.99999974E-6 : f32
    %20 = vector.broadcast %cst_10 : f32 to vector<8x1xf32>
    %21 = arith.addf %17, %20 : vector<8x1xf32>
    %22 = math.rsqrt %21 : vector<8x1xf32>
    %23 = vector.broadcast %22 : vector<8x1xf32> to vector<8x32xf32>
    %24 = arith.mulf %19, %23 : vector<8x32xf32>
    %25 = vector.broadcast %5 : vector<1x32xf32> to vector<8x32xf32>
    %26 = arith.mulf %24, %25 : vector<8x32xf32>
    %27 = vector.broadcast %6 : vector<1x32xf32> to vector<8x32xf32>
    %28 = arith.addf %26, %27 : vector<8x32xf32>
    %c0_11 = arith.constant 0 : index
    %c0_12 = arith.constant 0 : index
    %29 = vector.load %arg6[%c0_11, %c0_12] : memref<32x32xf32, #tpu.memory_space<vmem>>, vector<32x32xf32>
    %cst_13 = arith.constant dense<0.000000e+00> : vector<8x32xf32>
    %30 = tpu.matmul %28, %29, %cst_13 {dimension_numbers = #tpu.dot_dimension_numbers<[1], [0], [0], [1], [0, 0, 1, 1], [], []>} : vector<8x32xf32>, vector<32x32xf32>, vector<8x32xf32> -> vector<8x32xf32>
    %c0_14 = arith.constant 0 : index
    %c0_15 = arith.constant 0 : index
    %31 = vector.load %arg7[%c0_14, %c0_15] : memref<1x32xf32, #tpu.memory_space<vmem>>, vector<1x32xf32>
    %32 = vector.broadcast %31 : vector<1x32xf32> to vector<8x32xf32>
    %33 = arith.addf %30, %32 : vector<8x32xf32>
    %34 = vector.shape_cast %33 : vector<8x32xf32> to vector<8x4x8xf32>
    %35 = tpu.transpose %34, [1, 0, 2] : vector<8x4x8xf32> -> vector<4x8x8xf32>
    %c0_16 = arith.constant 0 : index
    %c0_17 = arith.constant 0 : index
    %c0_18 = arith.constant 0 : index
    %36 = vector.load %arg21[%c0_16, %c0_17, %c0_18] : memref<4x8x8xf32, #tpu.memory_space<vmem>>, vector<4x8x8xf32>
    "tpu.trace_start"() <{level = 10 : i32, message = "hqd,hkd->hqk"}> : () -> ()
    %cst_19 = arith.constant dense<0.000000e+00> : vector<4x8x8xf32>
    %37 = tpu.matmul %35, %36, %cst_19 {dimension_numbers = #tpu.dot_dimension_numbers<[2], [2], [1], [1], [0, 0, 0, 1, 1, 1], [0], [0]>} : vector<4x8x8xf32>, vector<4x8x8xf32>, vector<4x8x8xf32> -> vector<4x8x8xf32>
    "tpu.trace_stop"() : () -> ()
    %c8_i32 = arith.constant 8 : i32
    %38 = arith.muli %arg1, %c8_i32 : i32
    %39 = tpu.iota {dimensions = array<i32: 0>} : vector<8x8xi32>
    %40 = vector.broadcast %38 : i32 to vector<8x8xi32>
    %41 = arith.addi %40, %39 : vector<8x8xi32>
    %42 = tpu.iota {dimensions = array<i32: 1>} : vector<8x8xi32>
    %43 = arith.cmpi sle, %42, %41 : vector<8x8xi32>
    %44 = vector.shape_cast %43 : vector<8x8xi1> to vector<1x8x8xi1>
    %cst_20 = arith.constant 0xFF800000 : f32
    %45 = vector.shape_cast %44 : vector<1x8x8xi1> to vector<1x8x8xi1>
    %46 = vector.broadcast %45 : vector<1x8x8xi1> to vector<4x8x8xi1>
    %47 = vector.broadcast %cst_20 : f32 to vector<4x8x8xf32>
    %48 = arith.select %46, %37, %47 : vector<4x8x8xi1>, vector<4x8x8xf32>
    %cst_21 = arith.constant dense<0xFF800000> : vector<4x8xf32>
    %49 = vector.multi_reduction <maximumf>, %48, %cst_21 [2] : vector<4x8x8xf32> to vector<4x8xf32>
    %50 = vector.shape_cast %49 : vector<4x8xf32> to vector<4x8x1xf32>
    %51 = vector.broadcast %50 : vector<4x8x1xf32> to vector<4x8x8xf32>
    %52 = arith.subf %48, %51 : vector<4x8x8xf32>
    %53 = math.exp %52 : vector<4x8x8xf32>
    %cst_22 = arith.constant dense<0.000000e+00> : vector<4x8xf32>
    %54 = vector.multi_reduction <add>, %53, %cst_22 [2] : vector<4x8x8xf32> to vector<4x8xf32>
    %55 = vector.shape_cast %54 : vector<4x8xf32> to vector<4x8x1xf32>
    %56 = tpu.reciprocal %55 {approx = true} : vector<4x8x1xf32> -> vector<4x8x1xf32>
    %57 = vector.broadcast %56 : vector<4x8x1xf32> to vector<4x8x8xf32>
    %58 = arith.mulf %53, %57 : vector<4x8x8xf32>
    %c0_23 = arith.constant 0 : index
    %c0_24 = arith.constant 0 : index
    %c0_25 = arith.constant 0 : index
    %59 = vector.load %arg22[%c0_23, %c0_24, %c0_25] : memref<4x8x8xf32, #tpu.memory_space<vmem>>, vector<4x8x8xf32>
    "tpu.trace_start"() <{level = 10 : i32, message = "hqk,hkd->hqd"}> : () -> ()
    %cst_26 = arith.constant dense<0.000000e+00> : vector<4x8x8xf32>
    %60 = tpu.matmul %58, %59, %cst_26 {dimension_numbers = #tpu.dot_dimension_numbers<[2], [1], [1], [2], [0, 0, 0, 1, 1, 2], [0], [0]>} : vector<4x8x8xf32>, vector<4x8x8xf32>, vector<4x8x8xf32> -> vector<4x8x8xf32>
    "tpu.trace_stop"() : () -> ()
    %61 = tpu.transpose %60, [1, 0, 2] : vector<4x8x8xf32> -> vector<8x4x8xf32>
    %62 = vector.shape_cast %61 : vector<8x4x8xf32> to vector<8x32xf32>
    %c0_27 = arith.constant 0 : index
    %c0_28 = arith.constant 0 : index
    %63 = vector.load %arg12[%c0_27, %c0_28] : memref<32x32xf32, #tpu.memory_space<vmem>>, vector<32x32xf32>
    %cst_29 = arith.constant dense<0.000000e+00> : vector<8x32xf32>
    %64 = tpu.matmul %62, %63, %cst_29 {dimension_numbers = #tpu.dot_dimension_numbers<[1], [0], [0], [1], [0, 0, 1, 1], [], []>} : vector<8x32xf32>, vector<32x32xf32>, vector<8x32xf32> -> vector<8x32xf32>
    %c0_30 = arith.constant 0 : index
    %c0_31 = arith.constant 0 : index
    %65 = vector.load %arg13[%c0_30, %c0_31] : memref<1x32xf32, #tpu.memory_space<vmem>>, vector<1x32xf32>
    %66 = vector.broadcast %65 : vector<1x32xf32> to vector<8x32xf32>
    %67 = arith.addf %64, %66 : vector<8x32xf32>
    %68 = arith.addf %4, %67 : vector<8x32xf32>
    %c0_32 = arith.constant 0 : index
    %c0_33 = arith.constant 0 : index
    %69 = vector.load %arg14[%c0_32, %c0_33] : memref<1x32xf32, #tpu.memory_space<vmem>>, vector<1x32xf32>
    %c0_34 = arith.constant 0 : index
    %c0_35 = arith.constant 0 : index
    %70 = vector.load %arg15[%c0_34, %c0_35] : memref<1x32xf32, #tpu.memory_space<vmem>>, vector<1x32xf32>
    %cst_36 = arith.constant dense<0.000000e+00> : vector<8xf32>
    %71 = vector.multi_reduction <add>, %68, %cst_36 [1] : vector<8x32xf32> to vector<8xf32>
    %72 = vector.shape_cast %71 : vector<8xf32> to vector<8x1xf32>
    %cst_37 = arith.constant 3.200000e+01 : f32
    %73 = vector.broadcast %cst_37 : f32 to vector<8x1xf32>
    %74 = arith.divf %72, %73 : vector<8x1xf32>
    %75 = vector.broadcast %74 : vector<8x1xf32> to vector<8x32xf32>
    %76 = arith.subf %68, %75 : vector<8x32xf32>
    %77 = arith.mulf %76, %76 : vector<8x32xf32>
    %cst_38 = arith.constant dense<0.000000e+00> : vector<8xf32>
    %78 = vector.multi_reduction <add>, %77, %cst_38 [1] : vector<8x32xf32> to vector<8xf32>
    %79 = vector.shape_cast %78 : vector<8xf32> to vector<8x1xf32>
    %cst_39 = arith.constant 3.200000e+01 : f32
    %80 = vector.broadcast %cst_39 : f32 to vector<8x1xf32>
    %81 = arith.divf %79, %80 : vector<8x1xf32>
    %82 = vector.broadcast %74 : vector<8x1xf32> to vector<8x32xf32>
    %83 = arith.subf %68, %82 : vector<8x32xf32>
    %cst_40 = arith.constant 9.99999974E-6 : f32
    %84 = vector.broadcast %cst_40 : f32 to vector<8x1xf32>
    %85 = arith.addf %81, %84 : vector<8x1xf32>
    %86 = math.rsqrt %85 : vector<8x1xf32>
    %87 = vector.broadcast %86 : vector<8x1xf32> to vector<8x32xf32>
    %88 = arith.mulf %83, %87 : vector<8x32xf32>
    %89 = vector.broadcast %69 : vector<1x32xf32> to vector<8x32xf32>
    %90 = arith.mulf %88, %89 : vector<8x32xf32>
    %91 = vector.broadcast %70 : vector<1x32xf32> to vector<8x32xf32>
    %92 = arith.addf %90, %91 : vector<8x32xf32>
    %c0_41 = arith.constant 0 : index
    %c0_42 = arith.constant 0 : index
    %93 = vector.load %arg16[%c0_41, %c0_42] : memref<32x128xf32, #tpu.memory_space<vmem>>, vector<32x128xf32>
    %cst_43 = arith.constant dense<0.000000e+00> : vector<8x128xf32>
    %94 = tpu.matmul %92, %93, %cst_43 {dimension_numbers = #tpu.dot_dimension_numbers<[1], [0], [0], [1], [0, 0, 1, 1], [], []>} : vector<8x32xf32>, vector<32x128xf32>, vector<8x128xf32> -> vector<8x128xf32>
    %c0_44 = arith.constant 0 : index
    %c0_45 = arith.constant 0 : index
    %95 = vector.load %arg17[%c0_44, %c0_45] : memref<1x128xf32, #tpu.memory_space<vmem>>, vector<1x128xf32>
    %96 = vector.broadcast %95 : vector<1x128xf32> to vector<8x128xf32>
    %97 = arith.addf %94, %96 : vector<8x128xf32>
    %cst_46 = arith.constant 5.000000e-01 : f32
    %98 = vector.broadcast %cst_46 : f32 to vector<8x128xf32>
    %99 = arith.mulf %98, %97 : vector<8x128xf32>
    %cst_47 = arith.constant 0.707106769 : f32
    %100 = vector.broadcast %cst_47 : f32 to vector<8x128xf32>
    %101 = arith.mulf %97, %100 : vector<8x128xf32>
    %102 = math.erf %101 : vector<8x128xf32>
    %cst_48 = arith.constant 1.000000e+00 : f32
    %103 = vector.broadcast %cst_48 : f32 to vector<8x128xf32>
    %104 = arith.addf %103, %102 : vector<8x128xf32>
    %105 = arith.mulf %99, %104 : vector<8x128xf32>
    %c0_49 = arith.constant 0 : index
    %c0_50 = arith.constant 0 : index
    %106 = vector.load %arg18[%c0_49, %c0_50] : memref<128x32xf32, #tpu.memory_space<vmem>>, vector<128x32xf32>
    %cst_51 = arith.constant dense<0.000000e+00> : vector<8x32xf32>
    %107 = tpu.matmul %105, %106, %cst_51 {dimension_numbers = #tpu.dot_dimension_numbers<[1], [0], [0], [1], [0, 0, 1, 1], [], []>} : vector<8x128xf32>, vector<128x32xf32>, vector<8x32xf32> -> vector<8x32xf32>
    %c0_52 = arith.constant 0 : index
    %c0_53 = arith.constant 0 : index
    %108 = vector.load %arg19[%c0_52, %c0_53] : memref<1x32xf32, #tpu.memory_space<vmem>>, vector<1x32xf32>
    %109 = vector.broadcast %108 : vector<1x32xf32> to vector<8x32xf32>
    %110 = arith.addf %107, %109 : vector<8x32xf32>
    %111 = arith.addf %68, %110 : vector<8x32xf32>
    %c0_54 = arith.constant 0 : index
    %c0_55 = arith.constant 0 : index
    %c0_56 = arith.constant 0 : index
    %112 = vector.load %arg20[%c0_54, %c0_55, %c0_56] : memref<1x8x32xf32, #tpu.memory_space<vmem>>, vector<1x8x32xf32>
    %113 = vector.shape_cast %112 : vector<1x8x32xf32> to vector<8x32xf32>
    %114 = vector.shape_cast %111 : vector<8x32xf32> to vector<1x8x32xf32>
    tpu.vector_store %arg20[%c0_54, %c0_55, %c0_56], %114 {strides = array<i32>} : memref<1x8x32xf32, #tpu.memory_space<vmem>>, vector<1x8x32xf32>,
    return
  }
  func.func @transform_0(%arg0: i32, %arg1: i32) -> (i32, i32, i32) {
    %c0_i32 = arith.constant 0 : i32
    %c0_i32_0 = arith.constant 0 : i32
    %c0_i32_1 = arith.constant 0 : i32
    return %arg0, %c0_i32, %c0_i32_0 : i32, i32, i32
  }
  func.func @transform_1(%arg0: i32, %arg1: i32) -> (i32, i32, i32) {
    %c0_i32 = arith.constant 0 : i32
    %c0_i32_0 = arith.constant 0 : i32
    return %arg0, %arg1, %c0_i32 : i32, i32, i32
  }
  func.func @transform_2(%arg0: i32, %arg1: i32) -> (i32, i32) {
    %c0_i32 = arith.constant 0 : i32
    %c0_i32_0 = arith.constant 0 : i32
    %c0_i32_1 = arith.constant 0 : i32
    return %c0_i32, %c0_i32_0 : i32, i32
  }
  func.func @transform_3(%arg0: i32, %arg1: i32) -> (i32, i32) {
    %c0_i32 = arith.constant 0 : i32
    %c0_i32_0 = arith.constant 0 : i32
    %c0_i32_1 = arith.constant 0 : i32
    return %c0_i32, %c0_i32_0 : i32, i32
  }
  func.func @transform_4(%arg0: i32, %arg1: i32) -> (i32, i32) {
    %c0_i32 = arith.constant 0 : i32
    %c0_i32_0 = arith.constant 0 : i32
    %c0_i32_1 = arith.constant 0 : i32
    return %c0_i32, %c0_i32_0 : i32, i32
  }
  func.func @transform_5(%arg0: i32, %arg1: i32) -> (i32, i32) {
    %c0_i32 = arith.constant 0 : i32
    %c0_i32_0 = arith.constant 0 : i32
    %c0_i32_1 = arith.constant 0 : i32
    return %c0_i32, %c0_i32_0 : i32, i32
  }
  func.func @transform_6(%arg0: i32, %arg1: i32) -> (i32, i32) {
    %c0_i32 = arith.constant 0 : i32
    %c0_i32_0 = arith.constant 0 : i32
    %c0_i32_1 = arith.constant 0 : i32
    return %c0_i32, %c0_i32_0 : i32, i32
  }
  func.func @transform_7(%arg0: i32, %arg1: i32) -> (i32, i32) {
    %c0_i32 = arith.constant 0 : i32
    %c0_i32_0 = arith.constant 0 : i32
    %c0_i32_1 = arith.constant 0 : i32
    return %c0_i32, %c0_i32_0 : i32, i32
  }
  func.func @transform_8(%arg0: i32, %arg1: i32) -> (i32, i32) {
    %c0_i32 = arith.constant 0 : i32
    %c0_i32_0 = arith.constant 0 : i32
    %c0_i32_1 = arith.constant 0 : i32
    return %c0_i32, %c0_i32_0 : i32, i32
  }
  func.func @transform_9(%arg0: i32, %arg1: i32) -> (i32, i32) {
    %c0_i32 = arith.constant 0 : i32
    %c0_i32_0 = arith.constant 0 : i32
    %c0_i32_1 = arith.constant 0 : i32
    return %c0_i32, %c0_i32_0 : i32, i32
  }
  func.func @transform_10(%arg0: i32, %arg1: i32) -> (i32, i32) {
    %c0_i32 = arith.constant 0 : i32
    %c0_i32_0 = arith.constant 0 : i32
    %c0_i32_1 = arith.constant 0 : i32
    return %c0_i32, %c0_i32_0 : i32, i32
  }
  func.func @transform_11(%arg0: i32, %arg1: i32) -> (i32, i32) {
    %c0_i32 = arith.constant 0 : i32
    %c0_i32_0 = arith.constant 0 : i32
    %c0_i32_1 = arith.constant 0 : i32
    return %c0_i32, %c0_i32_0 : i32, i32
  }
  func.func @transform_12(%arg0: i32, %arg1: i32) -> (i32, i32) {
    %c0_i32 = arith.constant 0 : i32
    %c0_i32_0 = arith.constant 0 : i32
    %c0_i32_1 = arith.constant 0 : i32
    return %c0_i32, %c0_i32_0 : i32, i32
  }
  func.func @transform_13(%arg0: i32, %arg1: i32) -> (i32, i32) {
    %c0_i32 = arith.constant 0 : i32
    %c0_i32_0 = arith.constant 0 : i32
    %c0_i32_1 = arith.constant 0 : i32
    return %c0_i32, %c0_i32_0 : i32, i32
  }
  func.func @transform_14(%arg0: i32, %arg1: i32) -> (i32, i32) {
    %c0_i32 = arith.constant 0 : i32
    %c0_i32_0 = arith.constant 0 : i32
    %c0_i32_1 = arith.constant 0 : i32
    return %c0_i32, %c0_i32_0 : i32, i32
  }
  func.func @transform_15(%arg0: i32, %arg1: i32) -> (i32, i32) {
    %c0_i32 = arith.constant 0 : i32
    %c0_i32_0 = arith.constant 0 : i32
    %c0_i32_1 = arith.constant 0 : i32
    return %c0_i32, %c0_i32_0 : i32, i32
  }
  func.func @transform_16(%arg0: i32, %arg1: i32) -> (i32, i32) {
    %c0_i32 = arith.constant 0 : i32
    %c0_i32_0 = arith.constant 0 : i32
    %c0_i32_1 = arith.constant 0 : i32
    return %c0_i32, %c0_i32_0 : i32, i32
  }
  func.func @transform_17(%arg0: i32, %arg1: i32) -> (i32, i32) {
    %c0_i32 = arith.constant 0 : i32
    %c0_i32_0 = arith.constant 0 : i32
    %c0_i32_1 = arith.constant 0 : i32
    return %c0_i32, %c0_i32_0 : i32, i32
  }
  func.func @transform_18(%arg0: i32, %arg1: i32) -> (i32, i32, i32) {
    %c0_i32 = arith.constant 0 : i32
    %c0_i32_0 = arith.constant 0 : i32
    return %arg0, %arg1, %c0_i32 : i32, i32, i32
  }
}

</mosaic_0001>

<bundles_post_ra>
// kernel: tpu_custom_call.1
= control target key start
LH: loop header
LB: loop body
LE: loop exit
PB: predicated region body
PF: predicated region fallthrough
CT: control target
= control target key end

     0   :  { %s3762_s0 = inlined_call_operand.hbm [shape: f32[2,8,32], index: 0, kind: input, shape index: {}]   ;;  %s3763_s1 = inlined_call_operand.hbm [shape: f32[2,8,32], index: 1, kind: input, shape index: {}]   ;;  %s3764_s2 = inlined_call_operand.vmem [shape: f32[1,32], index: 2, kind: input, shape index: {}]   ;;  %s3765_s3 = inlined_call_operand.vmem [shape: f32[1,32], index: 3, kind: input, shape index: {}]   ;;  %s3766_s4 = inlined_call_operand.vmem [shape: f32[32,32], index: 4, kind: input, shape index: {}]   ;;  %s3767_s5 = inlined_call_operand.vmem [shape: f32[1,32], index: 5, kind: input, shape index: {}]   ;;  %s3768_s6 = inlined_call_operand.vmem [shape: f32[32,32], index: 6, kind: input, shape index: {}]   ;;  %s3769_s7 = inlined_call_operand.vmem [shape: f32[1,32], index: 7, kind: input, shape index: {}]   ;;  %s3770_s8 = inlined_call_operand.vmem [shape: f32[32,32], index: 8, kind: input, shape index: {}]   ;;  %s3771_s9 = inlined_call_operand.vmem [shape: f32[1,32], index: 9, kind: input, shape index: {}]   ;;  %s3772_s10 = inlined_call_operand.vmem [shape: f32[32,32], index: 10, kind: input, shape index: {}]   ;;  %s3773_s11 = inlined_call_operand.vmem [shape: f32[1,32], index: 11, kind: input, shape index: {}]   ;;  %s3774_s12 = inlined_call_operand.vmem [shape: f32[1,32], index: 12, kind: input, shape index: {}]   ;;  %s3775_s13 = inlined_call_operand.vmem [shape: f32[1,32], index: 13, kind: input, shape index: {}]   ;;  %s3776_s14 = inlined_call_operand.vmem [shape: f32[32,128], index: 14, kind: input, shape index: {}]   ;;  %s3777_s15 = inlined_call_operand.vmem [shape: f32[1,128], index: 15, kind: input, shape index: {}]   ;;  %s3778_s16 = inlined_call_operand.vmem [shape: f32[128,32], index: 16, kind: input, shape index: {}]   ;;  %s3779_s17 = inlined_call_operand.vmem [shape: f32[1,32], index: 17, kind: input, shape index: {}]   ;;  %s3780_s18 = inlined_call_operand.hbm [shape: f32[2,8,32], index: 18, kind: output, shape index: {}]  }
   0x1   :  { %3789 = sst [smem:[#allocation21_spill]] %s3762_s0 }
   0x2   :  { %3790 = sst [smem:[#allocation22_spill]] %s3763_s1 }
   0x3   :  { %3791 = sst [smem:[#allocation23_spill]] %s3764_s2 }
   0x4   :  { %3792 = sst [smem:[#allocation24_spill]] %s3775_s13 }
   0x5   :  { %3793 = sst [smem:[#allocation25_spill]] %s3777_s15 }
   0x6   :  { %3794 = sst [smem:[#allocation26_spill]] %s3779_s17 }
   0x7   :  { %3795 = sst [smem:[#allocation27_spill]] %s3780_s18 }
   0x8   :  { %23 = vsyncpa [#allocation5], 0 }
   0x9   :  { %25 = vsyncpa [#allocation5 + $0x1], 0 }
   0xa   :  { %26 = vsyncpa [#allocation8], 0 }
   0xb   :  { %28 = vsyncpa [#allocation8 + $0x1], 0 }
   0xc   :  { %29 = vsyncpa [#allocation6], 0 }
   0xd   :  { %31 = vsyncpa [#allocation6 + $0x1], 0  ;;  %s3233_s27 = smov 0   ;;  %s3235_s28 = smov 0  }
   0xe   :  { %s3237_s29 = smov 0   ;;  %s3239_s30 = smov 0  }
   0xf   :  { %s3241_s0 = smov 0   ;;  %s3243_s19 = smov 0  }
  0x10 LB: > { %3796 = sst [smem:[#allocation13_spill]] %s3103_s27  ;;  %s2641_s1 = sadd.s32 4294967295, %s3123_s19   ;;  %s3123_s19 = sphi %s3243_s19, %s37_s19   ;;  %s3119_s0 = sphi %s3241_s0, %s3825_s0   ;;  %s3115_s30 = sphi %s3239_s30, %s3824_s30   ;;  %s3111_s29 = sphi %s3237_s29, %s3823_s29   ;;  %s3107_s28 = sphi %s3235_s28, %s3827_s28   ;;  %s3103_s27 = sphi %s3233_s27, %s3826_s27  }
  0x11   : > { %3797 = sst [smem:[#allocation14_spill]] %s3111_s29  ;;  %s2642_s20 = sadd.s32 4294967294, %s3123_s19  }
  0x12   : > { %3798 = sst [smem:[#allocation15_spill]] %s3115_s30  ;;  %s49_s21 = sadd.s32 1, %s3119_s0 }
  0x13   : > { %3799 = sst [smem:[#allocation16_spill]] %s3119_s0  ;;  %s56_s22 = sadd.s32 1, %s3111_s29 }
  0x14   : > { %p51_p0 = scmp.ge.s32.totalorder %s49_s21, 2  ;;  %p63_p1 = scmp.ne.s32.totalorder %s3111_s29, %s3107_s28 }
  0x15   : > { %p64_p2 = scmp.eq.s32.totalorder %s3123_s19, 0  ;;  %p69_p3 = scmp.ne.s32.totalorder %s3107_s28, %s3103_s27 }
  0x16   : > { %s3829_s21 = smov (%p51_p0, %s49_s21), 0  ;;  %p70_p5 = scmp.eq.s32.totalorder %s2641_s1, 0 }
  0x17   : > { %3800 = sst [smem:[#allocation17_spill]] %s3829_s21  ;;  %p3274_p4 = por %p64_p2, %p63_p1 }
  0x18   : > { %s53_s23 = ssub.s32 %s3119_s0, %s3829_s21  ;;  %p459_p6 = scmp.eq.s32.totalorder %s2641_s1, 1 }
  0x19   : > { %p54_p7 = scmp.eq.s32.totalorder %s53_s23, 0  ;;  %p3280_p8 = por %p70_p5, %p69_p3 }
  0x1a   : > { %p3284_p9 = por %p459_p6, %p63_p1  ;;  %p465_p10 = scmp.eq.s32.totalorder %s2642_s20, 1 }
  0x1b   : > { %s3289_s26 = scalar_select %p54_p7, %s3111_s29, %s56_s22  }
  0x1c   : > { %s3803_s25 = scalar_select %p3284_p9, 1, 0 }
  0x1d   : > { %3805 = sst [smem:[#allocation19_spill]] %s3289_s26  ;;  %p3291_p11 = por %p465_p10, %p69_p3 }
  0x1e   : > { %3804 = sst [smem:[#allocation18_spill]] %s3803_s25  ;;  %p2899_p13 = scmp.lt.s32.totalorder %s3123_s19, 2 }
  0x1f   : > { %s3806_s27 = scalar_select %p3291_p11, 1, 0 }
  0x20   : > { %s3298_s1 = sand.u32 1, %s3111_s29   ;;  %s2646_s21 = sshll.u32 %s3119_s0, 7 }
  0x21   : > { %3807 = sst [smem:[#allocation20_spill]] %s3806_s27  ;;  %s2645_s23 = sshll.u32 %s3298_s1, 3 }
  0x22   : > { %s3808_s15 = sld [smem:[#allocation21_spill]]  ;;  %s537_s25 = scalar_lea.vmem [#allocation4], %s2645_s23 }
  0x23   : > { %s544_s20 = sshll.u32 %s537_s25, 4  ;;  %p3307_p0 = pnand %p2899_p13, %p3274_p4  ;;  %s545_s20 = int_to_ptr.vmem [resolvable:$true] %s544_s20 }
  0x24   : > { %p2649_p1 = scmp.ge.s32.totalorder %s3123_s19, 1  ;;  %p568_p2 = scmp.lt.s32.totalorder %s3123_s19, 3 }
  0x25   : > { %s534_s26 = scalar_lea.sflag [#allocation5], %s3298_s1  ;;  %p2985_p3 = pneg %p3307_p0 }
  0x26   : > { %s2996_s0 = scalar_lea.vmem %s545_s20, 128 }
  0x27   : > { %p2997_p5 = scmp.ne.s32.totalorder %s545_s20, %s2996_s0 }
  0x28   : > { %s542_s30 = scalar_lea.hbm %s3808_s15, %s2646_s21  ;;  %s3125_s15 = smov [#allocation4]  }
  0x29   : > { %p2999_p6 = pnand %p2997_p5, %p2985_p3  ;;  %s3001_s17 = sshll.u32 %s3125_s15, 4  ;;  %s3002_s17 = int_to_ptr.vmem [resolvable:$false] %s3001_s17 }
  0x2a   : > { %s3003_s18 = scalar_lea.vmem %s3002_s17, 256  ;;  %p3004_p4 = scmp.lt.s32.totalorder %s545_s20, %s3002_s17 }
  0x2b   : > { %p3000_p7 = pneg %p2999_p6  ;;  %p3005_p10 = scmp.lt.s32.totalorder %s3003_s18, %s2996_s0 }
  0x2d   : > { %p3006_p13 = por %p3005_p10, %p3004_p4 }
  0x2f   : > { %p3007_p12 = pnand %p3006_p13, %p3000_p7 }
  0x31   : > { %3010 = shalt.err (!%p3007_p12)
}
  0x32   : > { %2891 = dma.hbm_to_vmem [thread:$0]  (!%p3307_p0), %s542_s30, 128, %s545_s20, %s534_s26  }
  0x33   : > { %p3325_p5 = pnand %p2649_p1, %p568_p2  ;;  %s3811_s17 = sld [smem:[#allocation22_spill]] }
  0x34   : > { %s555_s18 = scalar_lea.vmem [#allocation7], %s2645_s23  ;;  %s552_s27 = scalar_lea.sflag [#allocation8], %s3298_s1 }
  0x35   : > { %s563_s29 = sshll.u32 %s555_s18, 4  ;;  %s3126_s30 = smov [#allocation7]   ;;  %s564_s29 = int_to_ptr.vmem [resolvable:$true] %s563_s29 }
  0x36   : > { %s3024_s13 = scalar_lea.vmem %s564_s29, 128  ;;  %s3029_s26 = sshll.u32 %s3126_s30, 4  ;;  %s3030_s26 = int_to_ptr.vmem [resolvable:$false] %s3029_s26 }
  0x37   : > { %p3025_p12 = scmp.ne.s32.totalorder %s564_s29, %s3024_s13  ;;  %s3031_s20 = scalar_lea.vmem %s3030_s26, 256 }
  0x38   : > { %p3032_p1 = scmp.lt.s32.totalorder %s564_s29, %s3030_s26  ;;  %p3033_p2 = scmp.lt.s32.totalorder %s3031_s20, %s3024_s13 }
  0x39   : > { %s561_s0 = scalar_lea.hbm %s3811_s17, %s2646_s21  ;;  %p3027_p6 = pnand %p3025_p12, %p2985_p3 }
  0x3a   : > { %p3034_p4 = por %p3033_p2, %p3032_p1 }
  0x3b   : > { %p3028_p7 = pneg %p3027_p6 }
  0x3d   : > { %p3035_p10 = pnand %p3034_p4, %p3028_p7 }
  0x3f   : > { %3038 = shalt.err (!%p3035_p10)
}
  0x40   : > { %2894 = dma.hbm_to_vmem [thread:$0]  (!%p3307_p0), %s561_s0, 128, %s564_s29, %s552_s27  }
  0x41   : > { %572 = sbr.rel (%p3325_p5) target bundleno = 2508 (0x9cc), region = 92  ;;  %s3341_s21 = sand.u32 (!%p3325_p5), 1, %s3107_s28  }
  0x42   : > { %s3344_s1 = sshll.u32 (!%p3325_p5), %s3341_s21, 3  ;;  %s575_s23 = scalar_lea.sflag (!%p3325_p5), [#allocation5], %s3341_s21 }
  0x43   : > { %s578_s13 = scalar_lea.vmem (!%p3325_p5), [#allocation4], %s3344_s1 }
  0x46   : > { %3090 = dma.done.wait (%p3280_p8), %s575_s23, 128  }
  0x47   : > { %3092 = vsyncadd (%p3280_p8), %s575_s23, 4294967168  ;;  %s584_s27 = scalar_lea.sflag [#allocation8], %s3341_s21  ;;  %s587_s29 = scalar_lea.vmem [#allocation7], %s3344_s1 }
  0x48   : > { %3094 = dma.done.wait (%p3280_p8), %s584_s27, 128  }
  0x49   : > { %3096 = vsyncadd (%p3280_p8), %s584_s27, 4294967168  ;;  %vm652_vm0 = vcmask 261120   ;;  %v649_v0 = vld [vmem:[%s578_s13] sm:$0xff]  ;;  %v3358_v1 = vld [vmem:[%s587_s29] sm:$0xff]  ;;  %v3127_v14 = vmov 0.0   ;;  %vm3128_vm1 = vmmov 0   ;;  %v861_v55 = vlaneseq }
  0x4a   : > { %v653_v2 = vsel %vm652_vm0, %v649_v0, 0.0  ;;  %v1151_v3 = vsel %vm652_vm0, %v3358_v1, 0.0  ;;  %2752 = vmatprep.subr.mxu1 %v3127_v14  ;;  %v684_v15 = vld [vmem:[%s3768_s6 + $0x18] sm:$0xff]  ;;  %2795 = vmatprep.subr.mxu0 %v3127_v14  ;;  %v683_v16 = vld [vmem:[%s3768_s6 + $0x10] sm:$0xff]  ;;  %v682_v17 = vld [vmem:[%s3768_s6 + $0x8] sm:$0xff]  ;;  %s3812_s20 = sld [smem:[#allocation23_spill]] }
  0x4b   : > { %654 = vadd.xlane.f32.xlu0 %v653_v2  ;;  %2753 = vmatpush3.msra.mxu1 %v684_v15  ;;  %v681_v18 = vld [vmem:[%s3768_s6] sm:$0xff]  ;;  %v768_v31 = vld [vmem:[%s3770_s8 + $0x18] sm:$0xff]  ;;  %v767_v32 = vld [vmem:[%s3770_s8 + $0x10] sm:$0xff]  ;;  %s3129_s22 = smov 120   ;;  %s3130_s2 = smov 112   ;;  %v3455_v59 = vshrl.u32 %v861_v55, 7 }
  0x4c   : > { %2754 = vmatprep.subr.mxu1 %v3127_v14  ;;  %2760 = vmatprep.mubr.msk.f32.mxu1 %vm3128_vm1, %v3127_v14  ;;  %v2654_v28 = vld [vmem:[%s3765_s3] ss:$0 sm:$0xff]  ;;  %v766_v33 = vld [vmem:[%s3770_s8 + $0x8] sm:$0xff]  ;;  %v1182_v37 = vld [vmem:[%s3766_s4 + $0x18] sm:$0xff]  ;;  %s3131_s25 = smov 104   ;;  %vm992_vm2 = vcmask 64512  }
  0x4d   : > { %2755 = vmatpush3.msra.mxu1 %v683_v16  ;;  %2797 = vmatprep.mubr.msk.f32.mxu0 %vm3128_vm1, %v3127_v14  ;;  %v765_v35 = vld [vmem:[%s3770_s8] sm:$0xff]  ;;  %v1181_v38 = vld [vmem:[%s3766_s4 + $0x10] sm:$0xff]  ;;  %v1180_v39 = vld [vmem:[%s3766_s4 + $0x8] sm:$0xff]  ;;  %v3132_v53 = vmov 1983009808   ;;  %vm2221_vm4 = vcmask 130048  }
  0x4e   : > { %2756 = vmatprep.subr.mxu1 %v3127_v14  ;;  %v1179_v41 = vld [vmem:[%s3766_s4] sm:$0xff]  ;;  %v859_v54 = vunpack.c.l.s4 %v3132_v53  ;;  %v3133_v56 = vmov 1934713408   ;;  %vm2223_vm5 = vcmask 195584   ;;  %s3813_s23 = sld [smem:[#allocation24_spill]]  ;;  %s644_s24 = scalar_lea.vmem [#allocation9], %s3344_s1 }
  0x4f   : > { %1152 = vadd.xlane.f32.xlu0 %v1151_v3  ;;  %2757 = vmatpush3.msra.mxu1 %v682_v17  ;;  %v2655_v43 = vld [vmem:[%s3769_s7] ss:$0 sm:$0xff]  ;;  %v891_v57 = vunpack.c.l.s4 %v3133_v56  ;;  %s3814_s0 = sld [smem:[#allocation15_spill]]  ;;  %s2524_s18 = scalar_lea.sflag [#allocation6], %s3341_s21 }
  0x50   : > { %2758 = vmatprep.subr.mxu1 %v3127_v14  ;;  %v2653_v26 = vld [vmem:[%s3812_s20] ss:$0 sm:$0xff]  ;;  %v860_v58 = vunpack.c.0.s8 %v859_v54  ;;  %s3815_s26 = sld [smem:[#allocation25_spill]] }
  0x51   : > { %2759 = vmatpush3.msra.mxu1 %v681_v18  ;;  %v2665_v49 = vld [vmem:[%s3767_s5] ss:$0 sm:$0xff]  ;;  %v892_v61 = vunpack.c.0.s8 %v891_v57  ;;  %s3817_s27 = sld [smem:[#allocation26_spill]] }
  0x52   : > { %2763 = vmatprep.subr.mxu1 %v3127_v14  ;;  %v3458_v62 = vsub.s32 %v860_v58, %v3455_v59  ;;  %s3818_s15 = sld [smem:[#allocation27_spill]] }
  0x55   : > { %s2691_s29 = sshll.u32 %s3814_s0, 7  ;;  %s3137_s0 = smov [#allocation9]  }
  0x56   : > { %s3043_s1 = sshll.u32 %s3137_s0, 4  ;;  %s3044_s1 = int_to_ptr.vmem [resolvable:$false] %s3043_s1 }
  0x58   : > { %s2536_s17 = scalar_lea.hbm %s3818_s15, %s2691_s29 }
  0xd4   : > { %v655_v4 = vpop.xlane.xlu0 %654 }
  0xd5   : > { %v657_v5 = vmul.f32 0.03125, %v655_v4 }
  0xd7   : > { %v658_v6 = vsub.f32 %v649_v0, %v657_v5 }
  0xd8   : > { %v1153_v7 = vpop.xlane.xlu0 %1152 }
  0xd9   : > { %v1155_v8 = vmul.f32 0.03125, %v1153_v7  ;;  %v659_v9 = vmul.f32 %v658_v6, %v658_v6 }
  0xdb   : > { %v1156_v10 = vsub.f32 %v3358_v1, %v1155_v8  ;;  %v660_v11 = vsel %vm652_vm0, %v659_v9, 0.0 }
  0xdc   : > { %661 = vadd.xlane.f32.xlu1 %v660_v11 }
  0xdd   : > { %v1157_v12 = vmul.f32 %v1156_v10, %v1156_v10 }
  0xdf   : > { %v1158_v13 = vsel %vm652_vm0, %v1157_v12, 0.0 }
  0xe0   : > { %1159 = vadd.xlane.f32.xlu1 %v1158_v13 }
 0x165   : > { %v662_v19 = vpop.xlane.xlu1 %661 }
 0x166   : > { %v663_v20 = vmul.f32 0.03125, %v662_v19 }
 0x168   : > { %v664_v21 = vadd.f32 1e-05, %v663_v20 }
 0x169   : > { %v1160_v22 = vpop.xlane.xlu1 %1159 }
 0x16a   : > { %2959 = vrsqrt.f32 %v664_v21  ;;  %v1161_v23 = vmul.f32 0.03125, %v1160_v22 }
 0x16c   : > { %v1162_v24 = vadd.f32 1e-05, %v1161_v23 }
 0x16e   : > { %2961 = vrsqrt.f32 %v1162_v24 }
 0x177   : > { %v2960_v25 = vpop.eup %2959 }
 0x178   : > { %v666_v27 = vmul.f32 %v2960_v25, %v658_v6  ;;  %v3461_v6 = vsub.s32 %v892_v61, %v3455_v59 }
 0x17a   : > { %v673_v29 = vmul.f32 %v2653_v26, %v666_v27 }
 0x17b   : > { %v2962_v34 = vpop.eup %2961 }
 0x17c   : > { %v680_v30 = vadd.f32 %v2654_v28, %v673_v29  ;;  %v1164_v36 = vmul.f32 %v2962_v34, %v1156_v10 }
 0x17e   : > { %2761 = vmatmul.mubr.msk.f32.vlgmr.msra.gmra.mxu1 %vm652_vm0, %v680_v30  ;;  %v1171_v40 = vmul.f32 %v2653_v26, %v1164_v36 }
 0x17f   : > { %2764 = vmatpush3.msra.mxu1 %v768_v31  ;;  %2771 = vmatprep.mubr.msk.f32.mxu1 %vm3128_vm1, %v3127_v14 }
 0x180   : > { %2765 = vmatprep.subr.mxu1 %v3127_v14  ;;  %v1178_v42 = vadd.f32 %v2654_v28, %v1171_v40 }
 0x181   : > { %2766 = vmatpush3.msra.mxu1 %v767_v32 }
 0x182   : > { %2767 = vmatprep.subr.mxu1 %v3127_v14 }
 0x183   : > { %2768 = vmatpush3.msra.mxu1 %v766_v33 }
 0x184   : > { %2769 = vmatprep.subr.mxu1 %v3127_v14 }
 0x185   : > { %2770 = vmatpush3.msra.mxu1 %v765_v35 }
 0x186   : > { %2772 = vmatmul.mubr.msk.f32.vlgmr.msra.gmra.mxu1 %vm652_vm0, %v680_v30  ;;  %2774 = vmatprep.subr.mxu1 %v3127_v14 }
 0x187   : > { %2775 = vmatpush3.msra.mxu1 %v1182_v37  ;;  %2782 = vmatprep.mubr.msk.f32.mxu1 %vm3128_vm1, %v3127_v14 }
 0x188   : > { %2776 = vmatprep.subr.mxu1 %v3127_v14 }
 0x189   : > { %2777 = vmatpush3.msra.mxu1 %v1181_v38 }
 0x18a   : > { %2778 = vmatprep.subr.mxu1 %v3127_v14 }
 0x18b   : > { %2779 = vmatpush3.msra.mxu1 %v1180_v39 }
 0x18c   : > { %2780 = vmatprep.subr.mxu1 %v3127_v14 }
 0x18d   : > { %2781 = vmatpush3.msra.mxu1 %v1179_v41 }
 0x18e   : > { %2783 = vmatmul.mubr.msk.f32.vlgmr.msra.gmra.mxu1 %vm652_vm0, %v1178_v42  ;;  %2785 = vmatprep.subr.mxu1 %v3127_v14 }
 0x18f   : > { %2787 = vmatprep.mubr.msk.f32.mxu1 %vm3128_vm1, %v3127_v14 }
 0x23e   : > { %v761_v44 = vpop.f32.mrf.mxu1 }
 0x23f   : > { %v762_v45 = vadd.f32 %v2655_v43, %v761_v44 }
 0x240   : > { %v2762_v46 = vpop.f32.mrf.mxu1 }
 0x241   : > { %847 = vrot.lane.b32.xlu0 %v762_v45, %s3129_s22  ;;  %850 = vrot.lane.b32.xlu1 %v762_v45, %s3130_s2 }
 0x245   : > { %853 = vrot.lane.b32.xlu1 %v762_v45, %s3131_s25 }
 0x246   : > { %v3441_v47 = vpop.f32.mrf.mxu1 }
 0x248   : > { %v2773_v48 = vpop.f32.mrf.mxu1 }
 0x24e   : > { %v1259_v50 = vpop.f32.mrf.mxu1 }
 0x24f   : > { %v3446_v51 = vadd.f32 %v2665_v49, %v1259_v50 }
 0x250   : > { %v2784_v52 = vpop.f32.mrf.mxu1 }
 0x251   : > { %1267 = vrot.lane.b32.xlu0 %v3446_v51, %s3130_s2  ;;  %1264 = vrot.lane.b32.xlu1 %v3446_v51, %s3129_s22 }
 0x255   : > { %1270 = vrot.lane.b32.xlu1 %v3446_v51, %s3131_s25 }
 0x2b3   : > { %v851_v60 = vpop.permute.xlu1 %850  ;;  %v848_v2 = vpop.permute.xlu0 %847 }
 0x2b4   : > { %v856_v63 = vcombine.low %v762_v45, %v851_v60  ;;  %v857_v0 = vcombine.high %v762_v45, %v851_v60 }
 0x2b6   : > { %v864_v7 = vrot.slane %v856_v63, %v3458_v62  ;;  %v871_v8 = vrot.slane %v857_v0, %v3458_v62 }
 0x2b7   : > { %v854_v3 = vpop.permute.xlu1 %853 }
 0x2b8   : > { %v872_v4 = vcombine.low %v848_v2, %v854_v3  ;;  %v873_v5 = vcombine.high %v848_v2, %v854_v3 }
 0x2ba   : > { %v880_v9 = vrot.slane %v872_v4, %v3458_v62  ;;  %v887_v10 = vrot.slane %v873_v5, %v3458_v62 }
 0x2bc   : > { %v888_v11 = vcombine.low %v864_v7, %v880_v9  ;;  %v889_v12 = vcombine.high %v864_v7, %v880_v9  ;;  %v904_v13 = vcombine.low %v871_v8, %v887_v10  ;;  %v905_v15 = vcombine.high %v871_v8, %v887_v10 }
 0x2be   : > { %v896_v16 = vrot.slane %v888_v11, %v3461_v6  ;;  %v903_v17 = vrot.slane %v889_v12, %v3461_v6  ;;  %v912_v18 = vrot.slane %v904_v13, %v3461_v6  ;;  %v919_v19 = vrot.slane %v905_v15, %v3461_v6 }
 0x2c0   : > { %v924_v20 = vcombine.low %v896_v16, %v903_v17  ;;  %v2659_v21 = vcombine.high %v896_v16, %v903_v17  ;;  %v940_v22 = vcombine.low %v912_v18, %v919_v19  ;;  %v2660_v23 = vcombine.high %v912_v18, %v919_v19 }
 0x2c2   : > { %v931_v24 = vrot.slane %v924_v20, %v3458_v62  ;;  %v939_v25 = vrot.slane %v2659_v21, %v3458_v62  ;;  %v947_v26 = vrot.slane %v940_v22, %v3458_v62  ;;  %v955_v27 = vrot.slane %v2660_v23, %v3458_v62 }
 0x2c3   : > { %v1265_v28 = vpop.permute.xlu1 %1264  ;;  %v1268_v33 = vpop.permute.xlu0 %1267 }
 0x2c4   : > { %v956_v29 = vcombine.low %v931_v24, %v939_v25  ;;  %v957_v30 = vcombine.high %v931_v24, %v939_v25  ;;  %v972_v31 = vcombine.low %v947_v26, %v955_v27  ;;  %v973_v32 = vcombine.high %v947_v26, %v955_v27 }
 0x2c5   : > { %v1273_v38 = vcombine.low %v3446_v51, %v1268_v33  ;;  %v1274_v39 = vcombine.high %v3446_v51, %v1268_v33  ;;  %v1724_v26 = vand.u32 127, %v861_v55 }
 0x2c6   : > { %v964_v34 = vrot.slane %v956_v29, %v3461_v6  ;;  %v971_v35 = vrot.slane %v957_v30, %v3461_v6  ;;  %v980_v36 = vrot.slane %v972_v31, %v3461_v6  ;;  %v987_v37 = vrot.slane %v973_v32, %v3461_v6 }
 0x2c7   : > { %v1271_v40 = vpop.permute.xlu1 %1270  ;;  %v1281_v48 = vrot.slane %v1273_v38, %v3458_v62  ;;  %v1288_v49 = vrot.slane %v1274_v39, %v3458_v62  ;;  %vm1725_vm3 = vcmp.le.s32.totalorder %v1724_v26, %v3455_v59 }
 0x2c8   : > { %v988_v41 = vcombine.low %v964_v34, %v980_v36  ;;  %v989_v42 = vcombine.high %v964_v34, %v980_v36  ;;  %v990_v43 = vcombine.low %v971_v35, %v987_v37  ;;  %v991_v44 = vcombine.high %v971_v35, %v987_v37 }
 0x2c9   : > { %v1289_v45 = vcombine.low %v1265_v28, %v1271_v40  ;;  %v1290_v46 = vcombine.high %v1265_v28, %v1271_v40 }
 0x2ca   : > { %993 = vst.msk [vmem:[#allocation2] sm:$0xff] %vm992_vm2, %v988_v41  ;;  %994 = vst.msk [vmem:[#allocation2 + $0x8] sm:$0xff] %vm992_vm2, %v989_v42  ;;  %v2657_v42 = vld [vmem:[%s3771_s9] ss:$0 sm:$0xff] }
 0x2cb   : > { %995 = vst.msk [vmem:[#allocation2 + $0x10] sm:$0xff] %vm992_vm2, %v990_v43  ;;  %996 = vst.msk [vmem:[#allocation2 + $0x18] sm:$0xff] %vm992_vm2, %v991_v44  ;;  %v1297_v50 = vrot.slane %v1289_v45, %v3458_v62  ;;  %v1304_v51 = vrot.slane %v1290_v46, %v3458_v62  ;;  %v843_v43 = vadd.f32 %v2657_v42, %v3441_v47 }
 0x2cd   : > { %v1305_v52 = vcombine.low %v1281_v48, %v1297_v50  ;;  %v1306_v53 = vcombine.high %v1281_v48, %v1297_v50  ;;  %v1321_v54 = vcombine.low %v1288_v49, %v1304_v51  ;;  %v1322_v56 = vcombine.high %v1288_v49, %v1304_v51 }
 0x2cf   : > { %v1313_v57 = vrot.slane %v1305_v52, %v3461_v6  ;;  %v1320_v58 = vrot.slane %v1306_v53, %v3461_v6  ;;  %v1329_v60 = vrot.slane %v1321_v54, %v3461_v6  ;;  %v1336_v61 = vrot.slane %v1322_v56, %v3461_v6 }
 0x2d1   : > { %v1341_v63 = vcombine.low %v1313_v57, %v1320_v58  ;;  %v2667_v0 = vcombine.high %v1313_v57, %v1320_v58  ;;  %v1357_v2 = vcombine.low %v1329_v60, %v1336_v61  ;;  %v2668_v3 = vcombine.high %v1329_v60, %v1336_v61  ;;  %v1409_v4 = vld [vmem:[#allocation2] sm:$0xff]  ;;  %v1410_v22 = vld [vmem:[#allocation2 + $0x8] sm:$0xff] }
 0x2d2   : > { %v1411_v5 = vld [vmem:[#allocation2 + $0x10] sm:$0xff]  ;;  %2786 = vmatpush3.xpose.msk.msra.mxu1 %vm992_vm2, %v1409_v4  ;;  %v1412_v24 = vld [vmem:[#allocation2 + $0x18] sm:$0xff] }
 0x2d3   : > { %2796 = vmatpush3.xpose.msk.msra.mxu0 %vm992_vm2, %v1411_v5  ;;  %v1348_v7 = vrot.slane %v1341_v63, %v3458_v62  ;;  %v1356_v8 = vrot.slane %v2667_v0, %v3458_v62  ;;  %v1364_v9 = vrot.slane %v1357_v2, %v3458_v62  ;;  %v1372_v10 = vrot.slane %v2668_v3, %v3458_v62 }
 0x2d4   : > { %2790 = vmatprep.subr.mxu1 %v3127_v14  ;;  %2805 = vmatprep.subr.mxu0 %v3127_v14 }
 0x2d5   : > { %v1373_v11 = vcombine.low %v1348_v7, %v1356_v8  ;;  %v1389_v12 = vcombine.low %v1364_v9, %v1372_v10  ;;  %v1374_v13 = vcombine.high %v1348_v7, %v1356_v8  ;;  %v1390_v15 = vcombine.high %v1364_v9, %v1372_v10 }
 0x2d7   : > { %v1381_v16 = vrot.slane %v1373_v11, %v3461_v6  ;;  %v1397_v17 = vrot.slane %v1389_v12, %v3461_v6  ;;  %v1388_v18 = vrot.slane %v1374_v13, %v3461_v6  ;;  %v1404_v19 = vrot.slane %v1390_v15, %v3461_v6 }
 0x2d9   : > { %v1405_v20 = vcombine.low %v1381_v16, %v1397_v17  ;;  %v1407_v21 = vcombine.low %v1388_v18, %v1404_v19  ;;  %v1406_v23 = vcombine.high %v1381_v16, %v1397_v17  ;;  %v1408_v25 = vcombine.high %v1388_v18, %v1404_v19 }
 0x2db   : > { %2788 = vmatmul.mubr.msk.f32.vlgmr.msra.gmra.mxu1 %vm992_vm2, %v1405_v20  ;;  %2798 = vmatmul.mubr.msk.f32.vlgmr.msra.gmra.mxu0 %vm992_vm2, %v1407_v21 }
 0x2dc   : > { %2791 = vmatpush3.xpose.msk.msra.mxu1 %vm992_vm2, %v1410_v22  ;;  %2792 = vmatprep.mubr.msk.f32.mxu1 %vm3128_vm1, %v3127_v14 }
 0x2dd   : > { %2800 = vmatprep.subr.mxu1 %v3127_v14  ;;  %2807 = vmatprep.mubr.msk.f32.mxu0 %vm3128_vm1, %v3127_v14 }
 0x2df   : > { %2793 = vmatmul.mubr.msk.f32.vlgmr.msra.gmra.mxu1 %vm992_vm2, %v1406_v23 }
 0x2e0   : > { %2801 = vmatpush3.xpose.msk.msra.mxu1 %vm992_vm2, %v1412_v24  ;;  %2802 = vmatprep.mubr.msk.f32.mxu1 %vm3128_vm1, %v3127_v14 }
 0x2e1   : > { %2810 = vmatprep.subr.mxu1 %v3127_v14 }
 0x2e3   : > { %2803 = vmatmul.mubr.msk.f32.vlgmr.msra.gmra.mxu1 %vm992_vm2, %v1408_v25 }
 0x2e4   : > { %2812 = vmatprep.mubr.msk.f32.mxu1 %vm3128_vm1, %v3127_v14 }
 0x39b   : > { %v1486_v27 = vpop.f32.mrf.mxu1  ;;  %v1638_v28 = vpop.f32.mrf.mxu0 }
 0x39c   : > { %v1728_v29 = vsel %vm1725_vm3, %v1486_v27, -inf  ;;  %v1730_v33 = vsel %vm1725_vm3, %v1638_v28, -inf }
 0x39d   : > { %v2789_v30 = vpop.f32.mrf.mxu1  ;;  %v2799_v31 = vpop.f32.mrf.mxu0  ;;  %v1732_v32 = vsel %vm992_vm2, %v1728_v29, -inf  ;;  %v1738_v36 = vsel %vm992_vm2, %v1730_v33, -inf }
 0x39e   : > { %1733 = vmax.xlane.f32.xlu0 %v1732_v32 }
 0x39f   : > { %v1562_v34 = vpop.f32.mrf.mxu1 }
 0x3a0   : > { %v1729_v35 = vsel %vm1725_vm3, %v1562_v34, -inf }
 0x3a1   : > { %v2794_v55 = vpop.f32.mrf.mxu1  ;;  %v1735_v37 = vsel %vm992_vm2, %v1729_v35, -inf }
 0x3a2   : > { %1739 = vmax.xlane.f32.xlu0 %v1738_v36  ;;  %1736 = vmax.xlane.f32.xlu1 %v1735_v37 }
 0x3a3   : > { %v1714_v38 = vpop.f32.mrf.mxu1 }
 0x3a4   : > { %v1731_v39 = vsel %vm1725_vm3, %v1714_v38, -inf }
 0x3a5   : > { %v2804_v40 = vpop.f32.mrf.mxu1  ;;  %v1741_v41 = vsel %vm992_vm2, %v1731_v39, -inf }
 0x3a6   : > { %1742 = vmax.xlane.f32.xlu0 %v1741_v41 }
 0x3b3   : > { %1001 = vrot.lane.b32.xlu1 %v843_v43, %s3130_s2  ;;  %s3135_s2 = smov 8  }
 0x3b7   : > { %1004 = vrot.lane.b32.xlu1 %v843_v43, %s3131_s25  ;;  %s3136_s25 = smov 24  }
 0x3bc   : > { %998 = vrot.lane.b32.xlu0 %v843_v43, %s3129_s22  ;;  %s3134_s22 = smov 16  }
 0x427   : > { %v1734_v44 = vpop.xlane.xlu0 %1733 }
 0x428   : > { %v1744_v45 = vsub.f32 %v1728_v29, %v1734_v44 }
 0x42a   : > { %v1748_v59 = vmul.f32 1.442695, %v1744_v45 }
 0x42b   : > { %v1740_v46 = vpop.xlane.xlu0 %1739  ;;  %v1737_v48 = vpop.xlane.xlu1 %1736 }
 0x42c   : > { %2963 = vpow2.f32 %v1748_v59  ;;  %v1746_v49 = vsub.f32 %v1730_v33, %v1740_v46  ;;  %v1745_v50 = vsub.f32 %v1729_v35, %v1737_v48 }
 0x42e   : > { %v1750_v51 = vmul.f32 1.442695, %v1745_v50  ;;  %v1752_v52 = vmul.f32 1.442695, %v1746_v49 }
 0x42f   : > { %v1002_v53 = vpop.permute.xlu1 %1001  ;;  %v1743_v54 = vpop.xlane.xlu0 %1742 }
 0x430   : > { %v1747_v56 = vsub.f32 %v1731_v39, %v1743_v54  ;;  %2965 = vpow2.f32 %v1750_v51  ;;  %v1007_v47 = vcombine.low %v843_v43, %v1002_v53  ;;  %v1008_v57 = vcombine.high %v843_v43, %v1002_v53 }
 0x431   : > { %2967 = vpow2.f32 %v1752_v52 }
 0x432   : > { %v1754_v58 = vmul.f32 1.442695, %v1747_v56  ;;  %v1015_v2 = vrot.slane %v1007_v47, %v3458_v62  ;;  %v1022_v3 = vrot.slane %v1008_v57, %v3458_v62 }
 0x433   : > { %v1005_v60 = vpop.permute.xlu1 %1004  ;;  %v999_v61 = vpop.permute.xlu0 %998 }
 0x434   : > { %2969 = vpow2.f32 %v1754_v58  ;;  %v1023_v63 = vcombine.low %v999_v61, %v1005_v60  ;;  %v1024_v0 = vcombine.high %v999_v61, %v1005_v60  ;;  %v2228_v60 = vld [vmem:[%s3772_s10 + $0x18] sm:$0xff] }
 0x436   : > { %v1031_v4 = vrot.slane %v1023_v63, %v3458_v62  ;;  %v1038_v5 = vrot.slane %v1024_v0, %v3458_v62 }
 0x438   : > { %v1039_v7 = vcombine.low %v1015_v2, %v1031_v4  ;;  %v1040_v8 = vcombine.high %v1015_v2, %v1031_v4  ;;  %v1055_v9 = vcombine.low %v1022_v3, %v1038_v5  ;;  %v1056_v10 = vcombine.high %v1022_v3, %v1038_v5 }
 0x439   : > { %v2964_v11 = vpop.eup %2963 }
 0x43a   : > { %v1047_v12 = vrot.slane %v1039_v7, %v3461_v6  ;;  %v1054_v13 = vrot.slane %v1040_v8, %v3461_v6  ;;  %v1063_v15 = vrot.slane %v1055_v9, %v3461_v6  ;;  %v1070_v16 = vrot.slane %v1056_v10, %v3461_v6 }
 0x43b   : > { %v1756_v17 = vsel %vm992_vm2, %v2964_v11, 0.0 }
 0x43c   : > { %v1075_v18 = vcombine.low %v1047_v12, %v1054_v13  ;;  %v2661_v19 = vcombine.high %v1047_v12, %v1054_v13  ;;  %v1091_v20 = vcombine.low %v1063_v15, %v1070_v16  ;;  %v2662_v21 = vcombine.high %v1063_v15, %v1070_v16  ;;  %1757 = vadd.xlane.f32.xlu0 %v1756_v17 }
 0x43d   : > { %v2966_v22 = vpop.eup %2965 }
 0x43e   : > { %v1082_v23 = vrot.slane %v1075_v18, %v3458_v62  ;;  %v1090_v24 = vrot.slane %v2661_v19, %v3458_v62  ;;  %v1098_v25 = vrot.slane %v1091_v20, %v3458_v62  ;;  %v1106_v26 = vrot.slane %v2662_v21, %v3458_v62  ;;  %v2968_v28 = vpop.eup %2967  ;;  %v2227_v21 = vld [vmem:[%s3772_s10 + $0x10] sm:$0xff] }
 0x43f   : > { %v1759_v27 = vsel %vm992_vm2, %v2966_v22, 0.0  ;;  %v1762_v37 = vsel %vm992_vm2, %v2968_v28, 0.0 }
 0x440   : > { %v1107_v29 = vcombine.low %v1082_v23, %v1090_v24  ;;  %v1108_v30 = vcombine.high %v1082_v23, %v1090_v24  ;;  %v1123_v31 = vcombine.low %v1098_v25, %v1106_v26  ;;  %v1124_v32 = vcombine.high %v1098_v25, %v1106_v26  ;;  %1760 = vadd.xlane.f32.xlu1 %v1759_v27 }
 0x441   : > { %v2970_v33 = vpop.eup %2969 }
 0x442   : > { %v1115_v34 = vrot.slane %v1107_v29, %v3461_v6  ;;  %v1122_v35 = vrot.slane %v1108_v30, %v3461_v6  ;;  %v1131_v55 = vrot.slane %v1123_v31, %v3461_v6  ;;  %v1138_v36 = vrot.slane %v1124_v32, %v3461_v6  ;;  %v2225_v31 = vld [vmem:[%s3772_s10] sm:$0xff] }
 0x443   : > { %v1765_v38 = vsel %vm992_vm2, %v2970_v33, 0.0 }
 0x444   : > { %v1139_v39 = vcombine.low %v1115_v34, %v1131_v55  ;;  %v1140_v40 = vcombine.high %v1115_v34, %v1131_v55  ;;  %v1141_v41 = vcombine.low %v1122_v35, %v1138_v36  ;;  %v1142_v42 = vcombine.high %v1122_v35, %v1138_v36  ;;  %1763 = vadd.xlane.f32.xlu1 %v1762_v37 }
 0x445   : > { %1766 = vadd.xlane.f32.xlu0 %v1765_v38 }
 0x446   : > { %1143 = vst.msk [vmem:[#allocation3] sm:$0xff] %vm992_vm2, %v1139_v39  ;;  %1144 = vst.msk [vmem:[#allocation3 + $0x8] sm:$0xff] %vm992_vm2, %v1140_v40 }
 0x447   : > { %1145 = vst.msk [vmem:[#allocation3 + $0x10] sm:$0xff] %vm992_vm2, %v1141_v41  ;;  %1146 = vst.msk [vmem:[#allocation3 + $0x18] sm:$0xff] %vm992_vm2, %v1142_v42 }
 0x44d   : > { %v1776_v43 = vld [vmem:[#allocation3] sm:$0xff]  ;;  %v1777_v44 = vld [vmem:[#allocation3 + $0x8] sm:$0xff] }
 0x44e   : > { %2806 = vmatpush3.msra.mxu0 %v1776_v43  ;;  %2811 = vmatpush3.msra.mxu1 %v1777_v44  ;;  %v1778_v51 = vld [vmem:[#allocation3 + $0x10] sm:$0xff]  ;;  %v1779_v54 = vld [vmem:[#allocation3 + $0x18] sm:$0xff] }
 0x44f   : > { %2815 = vmatprep.subr.mxu0 %v3127_v14  ;;  %2820 = vmatprep.subr.mxu1 %v3127_v14 }
 0x4c5   : > { %v1758_v45 = vpop.xlane.xlu0 %1757 }
 0x4c6   : > { %2971 = vrcp.f32 %v1758_v45 }
 0x4c9   : > { %v1761_v59 = vpop.xlane.xlu1 %1760 }
 0x4ca   : > { %2973 = vrcp.f32 %v1761_v59 }
 0x4cd   : > { %v1764_v46 = vpop.xlane.xlu1 %1763 }
 0x4ce   : > { %2975 = vrcp.f32 %v1764_v46  ;;  %v1767_v48 = vpop.xlane.xlu0 %1766 }
 0x4cf   : > { %2977 = vrcp.f32 %v1767_v48 }
 0x4d3   : > { %v2972_v49 = vpop.eup %2971 }
 0x4d4   : > { %v1772_v50 = vmul.f32 %v2972_v49, %v2964_v11 }
 0x4d6   : > { %2808 = vmatmul.mubr.msk.f32.vlgmr.msra.gmra.mxu0 %vm992_vm2, %v1772_v50 }
 0x4d7   : > { %v2974_v52 = vpop.eup %2973  ;;  %2816 = vmatpush3.msra.mxu0 %v1778_v51  ;;  %2817 = vmatprep.mubr.msk.f32.mxu0 %vm3128_vm1, %v3127_v14 }
 0x4d8   : > { %v1773_v53 = vmul.f32 %v2974_v52, %v2966_v22  ;;  %2825 = vmatprep.subr.mxu0 %v3127_v14  ;;  %v2226_v22 = vld [vmem:[%s3772_s10 + $0x8] sm:$0xff] }
 0x4da   : > { %2813 = vmatmul.mubr.msk.f32.vlgmr.msra.gmra.mxu1 %vm992_vm2, %v1773_v53 }
 0x4db   : > { %v2976_v56 = vpop.eup %2975  ;;  %2821 = vmatpush3.msra.mxu1 %v1779_v54  ;;  %2822 = vmatprep.mubr.msk.f32.mxu1 %vm3128_vm1, %v3127_v14 }
 0x4dc   : > { %v2978_v47 = vpop.eup %2977  ;;  %v1774_v57 = vmul.f32 %v2976_v56, %v2968_v28  ;;  %2836 = vmatprep.subr.mxu1 %v3127_v14 }
 0x4dd   : > { %v1775_v58 = vmul.f32 %v2978_v47, %v2970_v33 }
 0x4de   : > { %2818 = vmatmul.mubr.msk.f32.vlgmr.msra.gmra.mxu0 %vm992_vm2, %v1774_v57 }
 0x4df   : > { %2823 = vmatmul.mubr.msk.f32.vlgmr.msra.gmra.mxu1 %vm992_vm2, %v1775_v58  ;;  %2833 = vmatprep.mubr.msk.f32.mxu0 %vm3128_vm1, %v3127_v14 }
 0x4e0   : > { %2844 = vmatprep.mubr.msk.f32.mxu1 %vm3128_vm1, %v3127_v14  ;;  %2826 = vmatpush3.msra.mxu0 %v2228_v60 }
 0x4e1   : > { %2827 = vmatprep.subr.mxu0 %v3127_v14 }
 0x4e2   : > { %2828 = vmatpush3.msra.mxu0 %v2227_v21  ;;  %v2437_v21 = vld [vmem:[%s3778_s16 + $0x48] sm:$0xff] }
 0x4e3   : > { %2829 = vmatprep.subr.mxu0 %v3127_v14 }
 0x4e4   : > { %2830 = vmatpush3.msra.mxu0 %v2226_v22  ;;  %v2436_v22 = vld [vmem:[%s3778_s16 + $0x40] sm:$0xff] }
 0x4e5   : > { %2831 = vmatprep.subr.mxu0 %v3127_v14 }
 0x4e6   : > { %2832 = vmatpush3.msra.mxu0 %v2225_v31  ;;  %v2687_v31 = vld [vmem:[%s3815_s26] ss:$0 sm:$0xff]  ;;  %s3045_s26 = scalar_lea.vmem %s3044_s1, 256 }
 0x4e7   : > { %2847 = vmatprep.subr.mxu0 %v3127_v14 }
 0x596   : > { %v1849_v61 = vpop.f32.mrf.mxu0 }
 0x598   : > { %v2809_v63 = vpop.f32.mrf.mxu0 }
 0x59a   : > { %v1922_v0 = vpop.f32.mrf.mxu1 }
 0x59c   : > { %v2814_v2 = vpop.f32.mrf.mxu1 }
 0x59d   : > { %v2340_v2 = vld [vmem:[%s3776_s14 + $0x8] sm:$0xff] }
 0x59e   : > { %v1995_v3 = vpop.f32.mrf.mxu0 }
 0x59f   : > { %v2072_v4 = vcombine.low %v1849_v61, %v1995_v3  ;;  %v2073_v5 = vcombine.high %v1849_v61, %v1995_v3  ;;  %v2068_v7 = vpop.f32.mrf.mxu1  ;;  %v2339_v3 = vld [vmem:[%s3776_s14] sm:$0xff] }
 0x5a0   : > { %v2088_v8 = vcombine.low %v1922_v0, %v2068_v7  ;;  %v2089_v9 = vcombine.high %v1922_v0, %v2068_v7  ;;  %v2819_v10 = vpop.f32.mrf.mxu0  ;;  %v2342_v0 = vld [vmem:[%s3776_s14 + $0x18] sm:$0xff]  ;;  %v2441_v7 = vld [vmem:[%s3778_s16 + $0x68] sm:$0xff] }
 0x5a1   : > { %v2080_v11 = vrot.slane %v2072_v4, %v3458_v62  ;;  %v2087_v12 = vrot.slane %v2073_v5, %v3458_v62  ;;  %v2824_v13 = vpop.f32.mrf.mxu1  ;;  %2837 = vmatpush3.msra.mxu1 %v2342_v0  ;;  %v2443_v4 = vld [vmem:[%s3778_s16 + $0x78] sm:$0xff]  ;;  %v2442_v5 = vld [vmem:[%s3778_s16 + $0x70] sm:$0xff] }
 0x5a2   : > { %v2096_v15 = vrot.slane %v2088_v8, %v3458_v62  ;;  %v2103_v16 = vrot.slane %v2089_v9, %v3458_v62  ;;  %2838 = vmatprep.subr.mxu1 %v3127_v14  ;;  %v2440_v8 = vld [vmem:[%s3778_s16 + $0x60] sm:$0xff] }
 0x5a3   : > { %v2685_v13 = vld [vmem:[%s3774_s12] ss:$0 sm:$0xff] }
 0x5a4   : > { %v2104_v17 = vcombine.low %v2080_v11, %v2096_v15  ;;  %v2105_v18 = vcombine.high %v2080_v11, %v2096_v15  ;;  %v2120_v19 = vcombine.low %v2087_v12, %v2103_v16  ;;  %v2121_v20 = vcombine.high %v2087_v12, %v2103_v16  ;;  %v2686_v16 = vld [vmem:[%s3813_s23] ss:$0 sm:$0xff] }
 0x5a6   : > { %v2112_v23 = vrot.slane %v2104_v17, %v3461_v6  ;;  %v2119_v24 = vrot.slane %v2105_v18, %v3461_v6  ;;  %v2128_v25 = vrot.slane %v2120_v19, %v3461_v6  ;;  %v2135_v26 = vrot.slane %v2121_v20, %v3461_v6  ;;  %v2439_v19 = vld [vmem:[%s3778_s16 + $0x58] sm:$0xff]  ;;  %v2438_v20 = vld [vmem:[%s3778_s16 + $0x50] sm:$0xff] }
 0x5a8   : > { %v2140_v27 = vcombine.low %v2112_v23, %v2119_v24  ;;  %v2681_v28 = vcombine.high %v2112_v23, %v2119_v24  ;;  %v2156_v29 = vcombine.low %v2128_v25, %v2135_v26  ;;  %v2682_v30 = vcombine.high %v2128_v25, %v2135_v26  ;;  %v2435_v23 = vld [vmem:[%s3778_s16 + $0x38] sm:$0xff]  ;;  %v2434_v24 = vld [vmem:[%s3778_s16 + $0x30] sm:$0xff]  ;;  %v2433_v25 = vld [vmem:[%s3778_s16 + $0x28] sm:$0xff] }
 0x5a9   : > { %v2432_v26 = vld [vmem:[%s3778_s16 + $0x20] sm:$0xff] }
 0x5aa   : > { %v2147_v32 = vrot.slane %v2140_v27, %v3458_v62  ;;  %v2155_v33 = vrot.slane %v2681_v28, %v3458_v62  ;;  %v2163_v34 = vrot.slane %v2156_v29, %v3458_v62  ;;  %v2171_v35 = vrot.slane %v2682_v30, %v3458_v62  ;;  %v2431_v27 = vld [vmem:[%s3778_s16 + $0x18] sm:$0xff]  ;;  %v2430_v28 = vld [vmem:[%s3778_s16 + $0x10] sm:$0xff]  ;;  %v2429_v29 = vld [vmem:[%s3778_s16 + $0x8] sm:$0xff] }
 0x5ab   : > { %v2428_v30 = vld [vmem:[%s3778_s16] sm:$0xff] }
 0x5ac   : > { %v2173_v55 = vcombine.high %v2147_v32, %v2155_v33  ;;  %v2189_v36 = vcombine.high %v2163_v34, %v2171_v35  ;;  %v2172_v37 = vcombine.low %v2147_v32, %v2155_v33  ;;  %v2188_v38 = vcombine.low %v2163_v34, %v2171_v35 }
 0x5ae   : > { %v2187_v39 = vrot.slane %v2173_v55, %v3461_v6  ;;  %v2203_v40 = vrot.slane %v2189_v36, %v3461_v6  ;;  %v2180_v41 = vrot.slane %v2172_v37, %v3461_v6  ;;  %v2196_v42 = vrot.slane %v2188_v38, %v3461_v6  ;;  %v2683_v6 = vld [vmem:[%s3773_s11] ss:$0 sm:$0xff] }
 0x5af   : > { %v2689_v38 = vld [vmem:[%s3817_s27] ss:$0 sm:$0xff] }
 0x5b0   : > { %v2206_v43 = vcombine.low %v2187_v39, %v2203_v40  ;;  %v2205_v44 = vcombine.high %v2180_v41, %v2196_v42  ;;  %v2204_v45 = vcombine.low %v2180_v41, %v2196_v42  ;;  %v2207_v62 = vcombine.high %v2187_v39, %v2203_v40 }
 0x5b2   : > { %2213 = vrot.lane.b32.xlu1 %v2206_v43, %s3134_s22  ;;  %2209 = vrot.lane.b32.xlu0 %v2205_v44, %s3135_s2  ;;  %s2538_s22 = sshll.u32 %s644_s24, 4  ;;  %s2539_s22 = int_to_ptr.vmem [resolvable:$true] %s2538_s22 }
 0x5b3   : > { %s3039_s30 = scalar_lea.vmem %s2539_s22, 128  ;;  %p3046_p13 = scmp.lt.s32.totalorder %s2539_s22, %s3044_s1 }
 0x5b4   : > { %p3040_p8 = scmp.ne.s32.totalorder %s2539_s22, %s3039_s30  ;;  %p3047_p5 = scmp.lt.s32.totalorder %s3045_s26, %s3039_s30 }
 0x5b6   : > { %2217 = vrot.lane.b32.xlu1 %v2207_v62, %s3136_s25  ;;  %p3041_p0 = pnand %p3040_p8, %p3284_p9  ;;  %p3048_p12 = por %p3047_p5, %p3046_p13 }
 0x5b8   : > { %p3042_p3 = pneg %p3041_p0 }
 0x5ba   : > { %p3049_p6 = pnand %p3048_p12, %p3042_p3 }
 0x624   : > { %v2214_v59 = vpop.permute.xlu1 %2213  ;;  %v2210_v46 = vpop.permute.xlu0 %2209 }
 0x625   : > { %v2220_v48 = vsel %vm992_vm2, %v2204_v45, %v2210_v46 }
 0x626   : > { %v2222_v50 = vsel %vm2221_vm4, %v2220_v48, %v2214_v59 }
 0x628   : > { %v2218_v49 = vpop.permute.xlu1 %2217 }
 0x629   : > { %v2224_v51 = vsel %vm2223_vm5, %v2222_v50, %v2218_v49 }
 0x62a   : > { %2834 = vmatmul.mubr.msk.f32.vlgmr.msra.gmra.mxu0 %vm652_vm0, %v2224_v51 }
 0x62b   : > { %2879 = vmatprep.mubr.msk.f32.mxu0 %vm3128_vm1, %v3127_v14  ;;  %2848 = vmatpush3.msra.mxu0 %v2443_v4 }
 0x62c   : > { %2849 = vmatprep.subr.mxu0 %v3127_v14 }
 0x62d   : > { %2850 = vmatpush3.msra.mxu0 %v2442_v5 }
 0x62e   : > { %2851 = vmatprep.subr.mxu0 %v3127_v14 }
 0x62f   : > { %2852 = vmatpush3.msra.mxu0 %v2441_v7 }
 0x630   : > { %2853 = vmatprep.subr.mxu0 %v3127_v14 }
 0x631   : > { %2854 = vmatpush3.msra.mxu0 %v2440_v8 }
 0x632   : > { %2855 = vmatprep.subr.mxu0 %v3127_v14 }
 0x633   : > { %2856 = vmatpush3.msra.mxu0 %v2439_v19 }
 0x634   : > { %2857 = vmatprep.subr.mxu0 %v3127_v14 }
 0x635   : > { %2858 = vmatpush3.msra.mxu0 %v2438_v20 }
 0x636   : > { %2859 = vmatprep.subr.mxu0 %v3127_v14 }
 0x637   : > { %2860 = vmatpush3.msra.mxu0 %v2437_v21 }
 0x638   : > { %2861 = vmatprep.subr.mxu0 %v3127_v14 }
 0x639   : > { %2862 = vmatpush3.msra.mxu0 %v2436_v22 }
 0x63a   : > { %2863 = vmatprep.subr.mxu0 %v3127_v14 }
 0x63b   : > { %2864 = vmatpush3.msra.mxu0 %v2435_v23 }
 0x63c   : > { %2865 = vmatprep.subr.mxu0 %v3127_v14 }
 0x63d   : > { %2866 = vmatpush3.msra.mxu0 %v2434_v24 }
 0x63e   : > { %2867 = vmatprep.subr.mxu0 %v3127_v14 }
 0x63f   : > { %2868 = vmatpush3.msra.mxu0 %v2433_v25 }
 0x640   : > { %2869 = vmatprep.subr.mxu0 %v3127_v14 }
 0x641   : > { %2870 = vmatpush3.msra.mxu0 %v2432_v26 }
 0x642   : > { %2871 = vmatprep.subr.mxu0 %v3127_v14 }
 0x643   : > { %2872 = vmatpush3.msra.mxu0 %v2431_v27 }
 0x644   : > { %2873 = vmatprep.subr.mxu0 %v3127_v14 }
 0x645   : > { %2874 = vmatpush3.msra.mxu0 %v2430_v28 }
 0x646   : > { %2875 = vmatprep.subr.mxu0 %v3127_v14 }
 0x647   : > { %2876 = vmatpush3.msra.mxu0 %v2429_v29 }
 0x648   : > { %2877 = vmatprep.subr.mxu0 %v3127_v14 }
 0x649   : > { %2878 = vmatpush3.msra.mxu0 %v2428_v30 }
 0x6ea   : > { %v2305_v52 = vpop.f32.mrf.mxu0 }
 0x6eb   : > { %v2306_v53 = vadd.f32 %v2683_v6, %v2305_v52 }
 0x6ec   : > { %v2835_v54 = vpop.f32.mrf.mxu0 }
 0x6ed   : > { %v3622_v56 = vadd.f32 %v2306_v53, %v3358_v1  ;;  %v2341_v1 = vld [vmem:[%s3776_s14 + $0x10] sm:$0xff] }
 0x6ee   : > { %2839 = vmatpush3.msra.mxu1 %v2341_v1 }
 0x6ef   : > { %v2312_v47 = vsel %vm652_vm0, %v3622_v56, 0.0  ;;  %2840 = vmatprep.subr.mxu1 %v3127_v14 }
 0x6f0   : > { %2313 = vadd.xlane.f32.xlu0 %v2312_v47  ;;  %2841 = vmatpush3.msra.mxu1 %v2340_v2 }
 0x6f1   : > { %2842 = vmatprep.subr.mxu1 %v3127_v14 }
 0x6f2   : > { %2843 = vmatpush3.msra.mxu1 %v2339_v3 }
 0x779   : > { %v2314_v57 = vpop.xlane.xlu0 %2313 }
 0x77a   : > { %v2315_v58 = vmul.f32 0.03125, %v2314_v57 }
 0x77c   : > { %v2316_v60 = vsub.f32 %v3622_v56, %v2315_v58 }
 0x77e   : > { %v2317_v61 = vmul.f32 %v2316_v60, %v2316_v60 }
 0x780   : > { %v2318_v63 = vsel %vm652_vm0, %v2317_v61, 0.0 }
 0x781   : > { %2319 = vadd.xlane.f32.xlu1 %v2318_v63 }
 0x80a   : > { %v2320_v9 = vpop.xlane.xlu1 %2319 }
 0x80b   : > { %v2321_v10 = vmul.f32 0.03125, %v2320_v9 }
 0x80d   : > { %v2322_v11 = vadd.f32 1e-05, %v2321_v10 }
 0x80f   : > { %2979 = vrsqrt.f32 %v2322_v11 }
 0x81c   : > { %v2980_v12 = vpop.eup %2979 }
 0x81d   : > { %v2324_v15 = vmul.f32 %v2980_v12, %v2316_v60 }
 0x81f   : > { %v2331_v17 = vmul.f32 %v2685_v13, %v2324_v15 }
 0x821   : > { %v2338_v18 = vadd.f32 %v2686_v16, %v2331_v17 }
 0x823   : > { %2845 = vmatmul.mubr.msk.f32.vlgmr.msra.gmra.mxu1 %vm652_vm0, %v2338_v18 }
 0x8e3   : > { %v2419_v32 = vpop.f32.mrf.mxu1 }
 0x8e4   : > { %v2420_v33 = vadd.f32 %v2687_v31, %v2419_v32 }
 0x8e5   : > { %v2846_v34 = vpop.f32.mrf.mxu1 }
 0x8e6   : > { %v2424_v35 = vmul.f32 0.70710677, %v2420_v33  ;;  %v2423_v36 = vmul.f32 0.5, %v2420_v33 }
 0x8e8   : > { %2981 = verf.f32 %v2424_v35 }
 0x8f5   : > { %v2982_v55 = vpop.eup %2981 }
 0x8f6   : > { %v2426_v14 = vadd.f32 1.0, %v2982_v55 }
 0x8f8   : > { %v2427_v37 = vmul.f32 %v2426_v14, %v2423_v36 }
 0x8fa   : > { %2880 = vmatmul.mubr.f32.vlgmr.msra.gmra.mxu0 %v2427_v37 }
 0x9ba   : > { %v2517_v39 = vpop.f32.mrf.mxu0 }
 0x9bb   : > { %v2518_v40 = vadd.f32 %v2689_v38, %v2517_v39 }
 0x9bc   : > { %v2881_v41 = vpop.f32.mrf.mxu0 }
 0x9bd   : > { %v2521_v42 = vadd.f32 %v2518_v40, %v3622_v56 }
 0x9bf   : > { %2522 = vst.msk [vmem:[%s644_s24] sm:$0xff] %vm652_vm0, %v2521_v42 }
 0x9c0   : > { %3052 = shalt.err (!%p3049_p6)
}
 0x9c1   : > { %s3053_s23 = scalar_lea.hbm %s2536_s17, 128  ;;  %s3057_s27 = scalar_lea.hbm %s3818_s15, 256 }
 0x9c2   : > { %p3054_p7 = scmp.ne.s32.totalorder %s2536_s17, %s3053_s23  ;;  %p3058_p4 = scmp.lt.s32.totalorder %s2536_s17, %s3818_s15 }
 0x9c3   : > { %p3059_p10 = scmp.lt.s32.totalorder %s3057_s27, %s3053_s23 }
 0x9c4   : > { %p3055_p1 = pnand %p3054_p7, %p3284_p9 }
 0x9c5   : > { %p3060_p8 = por %p3059_p10, %p3058_p4 }
 0x9c6   : > { %p3056_p2 = pneg %p3055_p1 }
 0x9c8   : > { %p3061_p0 = pnand %p3060_p8, %p3056_p2 }
 0x9ca   : > { %3064 = shalt.err (!%p3061_p0)
}
 0x9cb   : > { %2886 = dma.vmem_to_hbm [thread:$0]  (%p3284_p9), %s2539_s22, 128, %s2536_s17, %s2524_s18  }
 0x9cc PF: > { %s3819_s2 = sld [smem:[#allocation13_spill]]  ;;  %p3821_p3 = scmp.ge.s32.totalorder %s3123_s19, 2 }
 0x9ce   : > { %p2896_p13 = pnand %p3821_p3, %p3291_p11 }
 0x9d0   : > { %p2897_p5 = pneg %p2896_p13 }
 0x9d2   : > { %s2550_s30 = sand.u32 1, %s3819_s2  }
 0x9d3   : > { %s2551_s0 = scalar_lea.sflag [#allocation6], %s2550_s30 }
 0x9d4   : > { %3098 = dma.done.wait (%p2897_p5), %s2551_s0, 128  }
 0x9d5   : > { %3100 = vsyncadd (%p2897_p5), %s2551_s0, 4294967168  ;;  %s37_s19 = sadd.s32 1, %s3123_s19   ;;  %s3822_s1 = sld [smem:[#allocation14_spill]] }
 0x9d6   : > { %p34_p12 = scmp.ge.s32.totalorder %s37_s19, 4   ;;  %s3823_s29 = sld [smem:[#allocation19_spill]] }
 0x9d7   : > { %s3824_s30 = sld [smem:[#allocation16_spill]]  ;;  %s3826_s27 = smov %s3107_s28 }
 0x9d8   : > { %s3825_s0 = sld [smem:[#allocation17_spill]]  ;;  %36 = sbr.rel (!%p34_p12) target bundleno = 16 (0x10), region = 154 }
 0x9db   : > { %s3827_s28 = smov %s3822_s1 }
 0x9dd   :  { %2556 = vsyncpa [#allocation5], 1 }
 0x9de   :  { %2558 = vsyncpa [#allocation5 + $0x1], 1 }
 0x9df   :  { %2559 = vsyncpa [#allocation8], 1 }
 0x9e0   :  { %2561 = vsyncpa [#allocation8 + $0x1], 1 }
 0x9e1   :  { %2562 = vsyncpa [#allocation6], 1 }
 0x9e2   :  { %2564 = vsyncpa [#allocation6 + $0x1], 1 }

</bundles_post_ra>
